<compile_context>
chip_gen: v5e
topology: v5e:2x2
jax: 0.10.0
libtpu: 0.0.40
codegen_flags: <defaults>
</compile_context>

<pallas_src>
import math

import jax
import jax.numpy as jnp
from jax import lax
from jax.experimental import pallas as pl
from jax.experimental.pallas import tpu as pltpu


def _layer_norm(x, gamma, beta, eps=1e-5):
    # PyTorch nn.LayerNorm semantics: biased variance, eps inside rsqrt.
    mu = jnp.mean(x, axis=-1, keepdims=True)
    xc = x - mu
    var = jnp.mean(xc * xc, axis=-1, keepdims=True)
    return xc * lax.rsqrt(var + eps) * gamma + beta


def _softmax_rows(s):
    m = jnp.max(s, axis=-1, keepdims=True)
    e = jnp.exp(s - m)
    return e * pl.reciprocal(jnp.sum(e, axis=-1, keepdims=True), approx=True)


def _make_kernel(batch_tile, seq_len, num_heads, head_dim):
    Bt, S, H, Dh = batch_tile, seq_len, num_heads, head_dim
    D = H * Dh
    M = Bt * S
    scale = 1.0 / math.sqrt(Dh)

    def kernel(x_ref, mask_ref,
               ln1g_ref, ln1b_ref,
               wq_ref, bq_ref, wk_ref, bk_ref, wv_ref, bv_ref, wo_ref, bo_ref,
               ln2g_ref, ln2b_ref, w1_ref, b1_ref, w2_ref, b2_ref,
               lnag_ref, lnab_ref, wd_ref, bd_ref, wu_ref, bu_ref,
               out_ref):
        # Fuse the batch tile into the GEMM M dimension (leading-dim merge: layout-free).
        x = x_ref[...].astype(jnp.float32).reshape(M, D)        # [Bt*S, D]
        mask = mask_ref[...].astype(jnp.float32)                 # [Bt, 1, S]
        # Additive attention bias, hoisted out of the head loop:
        # 0.0 where the key is attendable, -1e9 where masked (matches masked_fill(-1e9)).
        bias = (mask - 1.0) * 1e9                                # [Bt, 1, S]

        # ---------------- Sublayer 0: multi-head self-attention -----------------
        xn = _layer_norm(x, ln1g_ref[...], ln1b_ref[...])
        xnb = xn.astype(jnp.bfloat16)
        q = jnp.dot(xnb, wq_ref[...], preferred_element_type=jnp.float32) + bq_ref[...]
        k = jnp.dot(xnb, wk_ref[...], preferred_element_type=jnp.float32) + bk_ref[...]
        v = jnp.dot(xnb, wv_ref[...], preferred_element_type=jnp.float32) + bv_ref[...]
        q3 = (q * scale).reshape(Bt, S, D).astype(jnp.bfloat16)  # leading-dim split
        k3 = k.reshape(Bt, S, D).astype(jnp.bfloat16)
        v3 = v.reshape(Bt, S, D).astype(jnp.bfloat16)

        # Static unroll over heads; no concat: each head accumulates directly through
        # its slab of the output projection (wo_ref is pre-split to [H, Dh, D]).
        # TODO(synk): for long sequences add a query-tile grid axis / online softmax so
        # the [S, S] score matrix never lives whole in VMEM.
        attn_acc = None
        for h in range(H):
            lo = h * Dh
            qh = q3[:, :, lo:lo + Dh]                            # [Bt, S, Dh]
            kh = k3[:, :, lo:lo + Dh]
            vh = v3[:, :, lo:lo + Dh]
            s = jnp.einsum('bqd,bkd->bqk', qh, kh,
                           preferred_element_type=jnp.float32) + bias   # [Bt, S, S]
            p = _softmax_rows(s).astype(jnp.bfloat16)
            oh = jnp.einsum('bqk,bkd->bqd', p, vh,
                            preferred_element_type=jnp.float32)         # [Bt, S, Dh]
            contrib = jnp.dot(oh.reshape(M, Dh).astype(jnp.bfloat16), wo_ref[h],
                              preferred_element_type=jnp.float32)       # [Bt*S, D]
            attn_acc = contrib if attn_acc is None else attn_acc + contrib
        x1 = x + attn_acc + bo_ref[...]                          # residual (dropout = identity)

        # ---------------- Sublayer 1: position-wise feed forward ----------------
        # TODO(synk): at production D/F keep w1/w2 in HBM (memory_space=pl.ANY) and
        # pipeline the FFN over the F dimension instead of holding both resident.
        x1n = _layer_norm(x1, ln2g_ref[...], ln2b_ref[...]).astype(jnp.bfloat16)
        hmid = jnp.maximum(
            jnp.dot(x1n, w1_ref[...], preferred_element_type=jnp.float32) + b1_ref[...],
            0.0)
        ffn = jnp.dot(hmid.astype(jnp.bfloat16), w2_ref[...],
                      preferred_element_type=jnp.float32) + b2_ref[...]
        x2 = x1 + ffn                                            # residual

        # ---------- MixtureOfAdapter: target_domain bottleneck adapter ----------
        x2n = _layer_norm(x2, lnag_ref[...], lnab_ref[...]).astype(jnp.bfloat16)
        d = jnp.maximum(
            jnp.dot(x2n, wd_ref[...], preferred_element_type=jnp.float32) + bd_ref[...],
            0.0)
        up = jnp.dot(d.astype(jnp.bfloat16), wu_ref[...],
                     preferred_element_type=jnp.float32) + bu_ref[...]
        out = x2 + up                                            # adapter residual

        out_ref[...] = out.reshape(Bt, S, D).astype(out_ref.dtype)

    return kernel


def transformer_encoder_layer_with_mix_adapter(x, src_mask, params, *,
                                               num_heads, batch_tile=None):
    """x: [B, S, D] float32, src_mask: [B, 1, S] float32, params: dict of f32 weights."""
    B, S, D = x.shape
    head_dim = D // num_heads

    if batch_tile is None:
        # Fold batch rows into the GEMM M dimension, aiming for ~128 fused rows per step.
        batch_tile = max(1, min(B, max(1, 128 // max(S, 1))))
        while B % batch_tile:
            batch_tile -= 1
    assert B % batch_tile == 0

    bf16 = jnp.bfloat16
    # Matmul weights stored / DMA'd as bf16 (2x MXU throughput, half the weight traffic);
    # LayerNorm params and biases stay f32; all matmuls accumulate in f32.
    wo_split = params["wo"].reshape(num_heads, head_dim, D)      # per-head out-proj slabs
    param_list = [
        params["ln1_g"], params["ln1_b"],
        params["wq"].astype(bf16), params["bq"],
        params["wk"].astype(bf16), params["bk"],
        params["wv"].astype(bf16), params["bv"],
        wo_split.astype(bf16), params["bo"],
        params["ln2_g"], params["ln2_b"],
        params["w1"].astype(bf16), params["b1"],
        params["w2"].astype(bf16), params["b2"],
        params["lna_g"], params["lna_b"],
        params["wd"].astype(bf16), params["bd"],
        params["wu"].astype(bf16), params["bu"],
    ]

    in_specs = [
        pl.BlockSpec((batch_tile, S, D), lambda b: (b, 0, 0)),   # x: Bt batch rows per step
        pl.BlockSpec((batch_tile, 1, S), lambda b: (b, 0, 0)),   # mask
    ]
    for p in param_list:
        in_specs.append(
            pl.BlockSpec(p.shape, lambda b, nd=p.ndim: (0,) * nd))  # full weight, replicated

    out_spec = pl.BlockSpec((batch_tile, S, D), lambda b: (b, 0, 0))

    kernel = _make_kernel(batch_tile, S, num_heads, head_dim)

    return pl.pallas_call(
        kernel,
        out_shape=jax.ShapeDtypeStruct((B, S, D), x.dtype),
        grid=(B // batch_tile,),
        in_specs=in_specs,
        out_specs=out_spec,
        compiler_params=pltpu.CompilerParams(
            dimension_semantics=("parallel",),
            vmem_limit_bytes=48 * 1024 * 1024),
    )(x, src_mask, *param_list)


def init_params(key, feature_size, ff_size, adapter_size):
    """Deterministic synthetic parameters; shapes follow the PyTorch module's __init__."""
    D, F, A = feature_size, ff_size, adapter_size
    ks = jax.random.split(key, 10)
    std = 0.02

    def w(k, shape):
        return jax.random.normal(k, shape, jnp.float32) * std

    return {
        # SublayerConnection[0] LayerNorm + MultiHeadedAttention projections
        "ln1_g": jnp.ones((1, D), jnp.float32),
        "ln1_b": jnp.zeros((1, D), jnp.float32),
        "wq": w(ks[0], (D, D)), "bq": jnp.zeros((1, D), jnp.float32),
        "wk": w(ks[1], (D, D)), "bk": jnp.zeros((1, D), jnp.float32),
        "wv": w(ks[2], (D, D)), "bv": jnp.zeros((1, D), jnp.float32),
        "wo": w(ks[3], (D, D)), "bo": jnp.zeros((1, D), jnp.float32),
        # SublayerConnection[1] LayerNorm + PositionwiseFeedForward
        "ln2_g": jnp.ones((1, D), jnp.float32),
        "ln2_b": jnp.zeros((1, D), jnp.float32),
        "w1": w(ks[4], (D, F)), "b1": jnp.zeros((1, F), jnp.float32),
        "w2": w(ks[5], (F, D)), "b2": jnp.zeros((1, D), jnp.float32),
        # MixtureOfAdapterWithClassifier: one domain's bottleneck adapter
        "lna_g": jnp.ones((1, D), jnp.float32),
        "lna_b": jnp.zeros((1, D), jnp.float32),
        "wd": w(ks[6], (D, A)), "bd": jnp.zeros((1, A), jnp.float32),
        "wu": w(ks[7], (A, D)), "bu": jnp.zeros((1, D), jnp.float32),
    }


if __name__ == "__main__":
    # Small shapes consistent with the module: batch=2, seq=8, feature_size=128 (4 heads x 32),
    # ff=256, adapter bottleneck=32. D=128 keeps every HBM load/store lane-dense.
    B, S, D = 2, 8, 128
    NUM_HEADS = 4
    FF = 256
    ADAPTER = 32

    key = jax.random.PRNGKey(0)
    kx, kp = jax.random.split(key)

    x = jax.random.normal(kx, (B, S, D), jnp.float32)
    # Padding mask: batch 0 attends to all 8 keys, batch 1 to the first 6.
    lens = jnp.array([8, 6])
    src_mask = (jnp.arange(S)[None, :] < lens[:, None]).astype(jnp.float32)[:, None, :]  # [B,1,S]

    params = init_params(kp, D, FF, ADAPTER)

    # TODO(synk): mix_output fusion path (classifier-gated mixture over multiple domain
    # adapters with mix_weight / domain_mask) not implemented; this kernel covers the
    # single target_domain adapter path with dropout as identity (eval mode).
    out = transformer_encoder_layer_with_mix_adapter(
        x, src_mask, params, num_heads=NUM_HEADS)
    jax.block_until_ready(out)

    assert out.shape == (B, S, D) and out.dtype == jnp.float32
    assert bool(jnp.isfinite(out).all())
    print("KERNEL_OK")
</pallas_src>

<mosaic_0001>
module attributes {stable_mosaic.version = 11 : i64} {
  func.func @kernel(%arg0: i32, %arg1: memref<2x8x128xf32, #tpu.memory_space<vmem>>, %arg2: memref<2x1x8xf32, #tpu.memory_space<vmem>>, %arg3: memref<1x128xf32, #tpu.memory_space<vmem>>, %arg4: memref<1x128xf32, #tpu.memory_space<vmem>>, %arg5: memref<128x128xbf16, #tpu.memory_space<vmem>>, %arg6: memref<1x128xf32, #tpu.memory_space<vmem>>, %arg7: memref<128x128xbf16, #tpu.memory_space<vmem>>, %arg8: memref<1x128xf32, #tpu.memory_space<vmem>>, %arg9: memref<128x128xbf16, #tpu.memory_space<vmem>>, %arg10: memref<1x128xf32, #tpu.memory_space<vmem>>, %arg11: memref<4x32x128xbf16, #tpu.memory_space<vmem>>, %arg12: memref<1x128xf32, #tpu.memory_space<vmem>>, %arg13: memref<1x128xf32, #tpu.memory_space<vmem>>, %arg14: memref<1x128xf32, #tpu.memory_space<vmem>>, %arg15: memref<128x256xbf16, #tpu.memory_space<vmem>>, %arg16: memref<1x256xf32, #tpu.memory_space<vmem>>, %arg17: memref<256x128xbf16, #tpu.memory_space<vmem>>, %arg18: memref<1x128xf32, #tpu.memory_space<vmem>>, %arg19: memref<1x128xf32, #tpu.memory_space<vmem>>, %arg20: memref<1x128xf32, #tpu.memory_space<vmem>>, %arg21: memref<128x32xbf16, #tpu.memory_space<vmem>>, %arg22: memref<1x32xf32, #tpu.memory_space<vmem>>, %arg23: memref<32x128xbf16, #tpu.memory_space<vmem>>, %arg24: memref<1x128xf32, #tpu.memory_space<vmem>>, %arg25: memref<2x8x128xf32, #tpu.memory_space<vmem>>) attributes {dimension_semantics = [#tpu.dimension_semantics<parallel>], iteration_bounds = array<i64: 1>, scalar_prefetch = 0 : i64, scratch_operands = 0 : i64, tpu.core_type = #tpu.core_type<tc>, window_params = [{transform_indices = @transform_0, window_bounds = array<i64: 2, 8, 128>}, {transform_indices = @transform_1, window_bounds = array<i64: 2, 1, 8>}, {pipeline_mode = #tpu.pipeline_mode<synchronous>, transform_indices = @transform_2, window_bounds = array<i64: 1, 128>}, {pipeline_mode = #tpu.pipeline_mode<synchronous>, transform_indices = @transform_3, window_bounds = array<i64: 1, 128>}, {pipeline_mode = #tpu.pipeline_mode<synchronous>, transform_indices = @transform_4, window_bounds = array<i64: 128, 128>}, {pipeline_mode = #tpu.pipeline_mode<synchronous>, transform_indices = @transform_5, window_bounds = array<i64: 1, 128>}, {pipeline_mode = #tpu.pipeline_mode<synchronous>, transform_indices = @transform_6, window_bounds = array<i64: 128, 128>}, {pipeline_mode = #tpu.pipeline_mode<synchronous>, transform_indices = @transform_7, window_bounds = array<i64: 1, 128>}, {pipeline_mode = #tpu.pipeline_mode<synchronous>, transform_indices = @transform_8, window_bounds = array<i64: 128, 128>}, {pipeline_mode = #tpu.pipeline_mode<synchronous>, transform_indices = @transform_9, window_bounds = array<i64: 1, 128>}, {pipeline_mode = #tpu.pipeline_mode<synchronous>, transform_indices = @transform_10, window_bounds = array<i64: 4, 32, 128>}, {pipeline_mode = #tpu.pipeline_mode<synchronous>, transform_indices = @transform_11, window_bounds = array<i64: 1, 128>}, {pipeline_mode = #tpu.pipeline_mode<synchronous>, transform_indices = @transform_12, window_bounds = array<i64: 1, 128>}, {pipeline_mode = #tpu.pipeline_mode<synchronous>, transform_indices = @transform_13, window_bounds = array<i64: 1, 128>}, {pipeline_mode = #tpu.pipeline_mode<synchronous>, transform_indices = @transform_14, window_bounds = array<i64: 128, 256>}, {pipeline_mode = #tpu.pipeline_mode<synchronous>, transform_indices = @transform_15, window_bounds = array<i64: 1, 256>}, {pipeline_mode = #tpu.pipeline_mode<synchronous>, transform_indices = @transform_16, window_bounds = array<i64: 256, 128>}, {pipeline_mode = #tpu.pipeline_mode<synchronous>, transform_indices = @transform_17, window_bounds = array<i64: 1, 128>}, {pipeline_mode = #tpu.pipeline_mode<synchronous>, transform_indices = @transform_18, window_bounds = array<i64: 1, 128>}, {pipeline_mode = #tpu.pipeline_mode<synchronous>, transform_indices = @transform_19, window_bounds = array<i64: 1, 128>}, {pipeline_mode = #tpu.pipeline_mode<synchronous>, transform_indices = @transform_20, window_bounds = array<i64: 128, 32>}, {pipeline_mode = #tpu.pipeline_mode<synchronous>, transform_indices = @transform_21, window_bounds = array<i64: 1, 32>}, {pipeline_mode = #tpu.pipeline_mode<synchronous>, transform_indices = @transform_22, window_bounds = array<i64: 32, 128>}, {pipeline_mode = #tpu.pipeline_mode<synchronous>, transform_indices = @transform_23, window_bounds = array<i64: 1, 128>}, {transform_indices = @transform_24, window_bounds = array<i64: 2, 8, 128>}]} {
    %c0 = arith.constant 0 : index
    %c0_0 = arith.constant 0 : index
    %c0_1 = arith.constant 0 : index
    %0 = vector.load %arg1[%c0, %c0_0, %c0_1] : memref<2x8x128xf32, #tpu.memory_space<vmem>>, vector<2x8x128xf32>
    %1 = vector.shape_cast %0 : vector<2x8x128xf32> to vector<16x128xf32>
    %c0_2 = arith.constant 0 : index
    %c0_3 = arith.constant 0 : index
    %c0_4 = arith.constant 0 : index
    %2 = vector.load %arg2[%c0_2, %c0_3, %c0_4] : memref<2x1x8xf32, #tpu.memory_space<vmem>>, vector<2x1x8xf32>
    %cst = arith.constant 1.000000e+00 : f32
    %3 = vector.broadcast %cst : f32 to vector<2x1x8xf32>
    %4 = arith.subf %2, %3 : vector<2x1x8xf32>
    %cst_5 = arith.constant 1.000000e+09 : f32
    %5 = vector.broadcast %cst_5 : f32 to vector<2x1x8xf32>
    %6 = arith.mulf %4, %5 : vector<2x1x8xf32>
    %c0_6 = arith.constant 0 : index
    %c0_7 = arith.constant 0 : index
    %7 = vector.load %arg3[%c0_6, %c0_7] : memref<1x128xf32, #tpu.memory_space<vmem>>, vector<1x128xf32>
    %c0_8 = arith.constant 0 : index
    %c0_9 = arith.constant 0 : index
    %8 = vector.load %arg4[%c0_8, %c0_9] : memref<1x128xf32, #tpu.memory_space<vmem>>, vector<1x128xf32>
    %cst_10 = arith.constant dense<0.000000e+00> : vector<16xf32>
    %9 = vector.multi_reduction <add>, %1, %cst_10 [1] : vector<16x128xf32> to vector<16xf32>
    %10 = vector.shape_cast %9 : vector<16xf32> to vector<16x1xf32>
    %cst_11 = arith.constant 1.280000e+02 : f32
    %11 = vector.broadcast %cst_11 : f32 to vector<16x1xf32>
    %12 = arith.divf %10, %11 : vector<16x1xf32>
    %13 = vector.broadcast %12 : vector<16x1xf32> to vector<16x128xf32>
    %14 = arith.subf %1, %13 : vector<16x128xf32>
    %15 = arith.mulf %14, %14 : vector<16x128xf32>
    %cst_12 = arith.constant dense<0.000000e+00> : vector<16xf32>
    %16 = vector.multi_reduction <add>, %15, %cst_12 [1] : vector<16x128xf32> to vector<16xf32>
    %17 = vector.shape_cast %16 : vector<16xf32> to vector<16x1xf32>
    %cst_13 = arith.constant 1.280000e+02 : f32
    %18 = vector.broadcast %cst_13 : f32 to vector<16x1xf32>
    %19 = arith.divf %17, %18 : vector<16x1xf32>
    %cst_14 = arith.constant 9.99999974E-6 : f32
    %20 = vector.broadcast %cst_14 : f32 to vector<16x1xf32>
    %21 = arith.addf %19, %20 : vector<16x1xf32>
    %22 = math.rsqrt %21 : vector<16x1xf32>
    %23 = vector.broadcast %22 : vector<16x1xf32> to vector<16x128xf32>
    %24 = arith.mulf %14, %23 : vector<16x128xf32>
    %25 = vector.broadcast %7 : vector<1x128xf32> to vector<16x128xf32>
    %26 = arith.mulf %24, %25 : vector<16x128xf32>
    %27 = vector.broadcast %8 : vector<1x128xf32> to vector<16x128xf32>
    %28 = arith.addf %26, %27 : vector<16x128xf32>
    %29 = arith.truncf %28 : vector<16x128xf32> to vector<16x128xbf16>
    %c0_15 = arith.constant 0 : index
    %c0_16 = arith.constant 0 : index
    %30 = vector.load %arg5[%c0_15, %c0_16] : memref<128x128xbf16, #tpu.memory_space<vmem>>, vector<128x128xbf16>
    %cst_17 = arith.constant dense<0.000000e+00> : vector<16x128xf32>
    %31 = tpu.matmul %29, %30, %cst_17 {dimension_numbers = #tpu.dot_dimension_numbers<[1], [0], [0], [1], [0, 0, 1, 1], [], []>} : vector<16x128xbf16>, vector<128x128xbf16>, vector<16x128xf32> -> vector<16x128xf32>
    %c0_18 = arith.constant 0 : index
    %c0_19 = arith.constant 0 : index
    %32 = vector.load %arg6[%c0_18, %c0_19] : memref<1x128xf32, #tpu.memory_space<vmem>>, vector<1x128xf32>
    %33 = vector.broadcast %32 : vector<1x128xf32> to vector<16x128xf32>
    %34 = arith.addf %31, %33 : vector<16x128xf32>
    %c0_20 = arith.constant 0 : index
    %c0_21 = arith.constant 0 : index
    %35 = vector.load %arg7[%c0_20, %c0_21] : memref<128x128xbf16, #tpu.memory_space<vmem>>, vector<128x128xbf16>
    %cst_22 = arith.constant dense<0.000000e+00> : vector<16x128xf32>
    %36 = tpu.matmul %29, %35, %cst_22 {dimension_numbers = #tpu.dot_dimension_numbers<[1], [0], [0], [1], [0, 0, 1, 1], [], []>} : vector<16x128xbf16>, vector<128x128xbf16>, vector<16x128xf32> -> vector<16x128xf32>
    %c0_23 = arith.constant 0 : index
    %c0_24 = arith.constant 0 : index
    %37 = vector.load %arg8[%c0_23, %c0_24] : memref<1x128xf32, #tpu.memory_space<vmem>>, vector<1x128xf32>
    %38 = vector.broadcast %37 : vector<1x128xf32> to vector<16x128xf32>
    %39 = arith.addf %36, %38 : vector<16x128xf32>
    %c0_25 = arith.constant 0 : index
    %c0_26 = arith.constant 0 : index
    %40 = vector.load %arg9[%c0_25, %c0_26] : memref<128x128xbf16, #tpu.memory_space<vmem>>, vector<128x128xbf16>
    %cst_27 = arith.constant dense<0.000000e+00> : vector<16x128xf32>
    %41 = tpu.matmul %29, %40, %cst_27 {dimension_numbers = #tpu.dot_dimension_numbers<[1], [0], [0], [1], [0, 0, 1, 1], [], []>} : vector<16x128xbf16>, vector<128x128xbf16>, vector<16x128xf32> -> vector<16x128xf32>
    %c0_28 = arith.constant 0 : index
    %c0_29 = arith.constant 0 : index
    %42 = vector.load %arg10[%c0_28, %c0_29] : memref<1x128xf32, #tpu.memory_space<vmem>>, vector<1x128xf32>
    %43 = vector.broadcast %42 : vector<1x128xf32> to vector<16x128xf32>
    %44 = arith.addf %41, %43 : vector<16x128xf32>
    %cst_30 = arith.constant 0.176776692 : f32
    %45 = vector.broadcast %cst_30 : f32 to vector<16x128xf32>
    %46 = arith.mulf %34, %45 : vector<16x128xf32>
    %47 = vector.shape_cast %46 : vector<16x128xf32> to vector<2x8x128xf32>
    %48 = arith.truncf %47 : vector<2x8x128xf32> to vector<2x8x128xbf16>
    %49 = vector.shape_cast %39 : vector<16x128xf32> to vector<2x8x128xf32>
    %50 = arith.truncf %49 : vector<2x8x128xf32> to vector<2x8x128xbf16>
    %51 = vector.shape_cast %44 : vector<16x128xf32> to vector<2x8x128xf32>
    %52 = arith.truncf %51 : vector<2x8x128xf32> to vector<2x8x128xbf16>
    %53 = vector.extract_strided_slice %48 {offsets = [0, 0, 0], sizes = [2, 8, 32], strides = [1, 1, 1]} : vector<2x8x128xbf16> to vector<2x8x32xbf16>
    %54 = vector.extract_strided_slice %50 {offsets = [0, 0, 0], sizes = [2, 8, 32], strides = [1, 1, 1]} : vector<2x8x128xbf16> to vector<2x8x32xbf16>
    %55 = vector.extract_strided_slice %52 {offsets = [0, 0, 0], sizes = [2, 8, 32], strides = [1, 1, 1]} : vector<2x8x128xbf16> to vector<2x8x32xbf16>
    "tpu.trace_start"() <{level = 10 : i32, message = "bqd,bkd->bqk"}> : () -> ()
    %cst_31 = arith.constant dense<0.000000e+00> : vector<2x8x8xf32>
    %56 = tpu.matmul %53, %54, %cst_31 {dimension_numbers = #tpu.dot_dimension_numbers<[2], [2], [1], [1], [0, 0, 0, 1, 1, 1], [0], [0]>} : vector<2x8x32xbf16>, vector<2x8x32xbf16>, vector<2x8x8xf32> -> vector<2x8x8xf32>
    "tpu.trace_stop"() : () -> ()
    %57 = vector.broadcast %6 : vector<2x1x8xf32> to vector<2x8x8xf32>
    %58 = arith.addf %56, %57 : vector<2x8x8xf32>
    %cst_32 = arith.constant dense<0xFF800000> : vector<2x8xf32>
    %59 = vector.multi_reduction <maximumf>, %58, %cst_32 [2] : vector<2x8x8xf32> to vector<2x8xf32>
    %60 = vector.shape_cast %59 : vector<2x8xf32> to vector<2x8x1xf32>
    %61 = vector.broadcast %60 : vector<2x8x1xf32> to vector<2x8x8xf32>
    %62 = arith.subf %58, %61 : vector<2x8x8xf32>
    %63 = math.exp %62 : vector<2x8x8xf32>
    %cst_33 = arith.constant dense<0.000000e+00> : vector<2x8xf32>
    %64 = vector.multi_reduction <add>, %63, %cst_33 [2] : vector<2x8x8xf32> to vector<2x8xf32>
    %65 = vector.shape_cast %64 : vector<2x8xf32> to vector<2x8x1xf32>
    %66 = tpu.reciprocal %65 {approx = true} : vector<2x8x1xf32> -> vector<2x8x1xf32>
    %67 = vector.broadcast %66 : vector<2x8x1xf32> to vector<2x8x8xf32>
    %68 = arith.mulf %63, %67 : vector<2x8x8xf32>
    %69 = arith.truncf %68 : vector<2x8x8xf32> to vector<2x8x8xbf16>
    "tpu.trace_start"() <{level = 10 : i32, message = "bqk,bkd->bqd"}> : () -> ()
    %cst_34 = arith.constant dense<0.000000e+00> : vector<2x8x32xf32>
    %70 = tpu.matmul %69, %55, %cst_34 {dimension_numbers = #tpu.dot_dimension_numbers<[2], [1], [1], [2], [0, 0, 0, 1, 1, 2], [0], [0]>} : vector<2x8x8xbf16>, vector<2x8x32xbf16>, vector<2x8x32xf32> -> vector<2x8x32xf32>
    "tpu.trace_stop"() : () -> ()
    %71 = vector.shape_cast %70 : vector<2x8x32xf32> to vector<16x32xf32>
    %72 = arith.truncf %71 : vector<16x32xf32> to vector<16x32xbf16>
    %c0_35 = arith.constant 0 : index
    %c0_36 = arith.constant 0 : index
    %c0_37 = arith.constant 0 : index
    %73 = vector.load %arg11[%c0_35, %c0_36, %c0_37] : memref<4x32x128xbf16, #tpu.memory_space<vmem>>, vector<1x32x128xbf16>
    %74 = vector.shape_cast %73 : vector<1x32x128xbf16> to vector<32x128xbf16>
    %cst_38 = arith.constant dense<0.000000e+00> : vector<16x128xf32>
    %75 = tpu.matmul %72, %74, %cst_38 {dimension_numbers = #tpu.dot_dimension_numbers<[1], [0], [0], [1], [0, 0, 1, 1], [], []>} : vector<16x32xbf16>, vector<32x128xbf16>, vector<16x128xf32> -> vector<16x128xf32>
    %76 = vector.extract_strided_slice %48 {offsets = [0, 0, 32], sizes = [2, 8, 32], strides = [1, 1, 1]} : vector<2x8x128xbf16> to vector<2x8x32xbf16>
    %77 = vector.extract_strided_slice %50 {offsets = [0, 0, 32], sizes = [2, 8, 32], strides = [1, 1, 1]} : vector<2x8x128xbf16> to vector<2x8x32xbf16>
    %78 = vector.extract_strided_slice %52 {offsets = [0, 0, 32], sizes = [2, 8, 32], strides = [1, 1, 1]} : vector<2x8x128xbf16> to vector<2x8x32xbf16>
    "tpu.trace_start"() <{level = 10 : i32, message = "bqd,bkd->bqk"}> : () -> ()
    %cst_39 = arith.constant dense<0.000000e+00> : vector<2x8x8xf32>
    %79 = tpu.matmul %76, %77, %cst_39 {dimension_numbers = #tpu.dot_dimension_numbers<[2], [2], [1], [1], [0, 0, 0, 1, 1, 1], [0], [0]>} : vector<2x8x32xbf16>, vector<2x8x32xbf16>, vector<2x8x8xf32> -> vector<2x8x8xf32>
    "tpu.trace_stop"() : () -> ()
    %80 = vector.broadcast %6 : vector<2x1x8xf32> to vector<2x8x8xf32>
    %81 = arith.addf %79, %80 : vector<2x8x8xf32>
    %cst_40 = arith.constant dense<0xFF800000> : vector<2x8xf32>
    %82 = vector.multi_reduction <maximumf>, %81, %cst_40 [2] : vector<2x8x8xf32> to vector<2x8xf32>
    %83 = vector.shape_cast %82 : vector<2x8xf32> to vector<2x8x1xf32>
    %84 = vector.broadcast %83 : vector<2x8x1xf32> to vector<2x8x8xf32>
    %85 = arith.subf %81, %84 : vector<2x8x8xf32>
    %86 = math.exp %85 : vector<2x8x8xf32>
    %cst_41 = arith.constant dense<0.000000e+00> : vector<2x8xf32>
    %87 = vector.multi_reduction <add>, %86, %cst_41 [2] : vector<2x8x8xf32> to vector<2x8xf32>
    %88 = vector.shape_cast %87 : vector<2x8xf32> to vector<2x8x1xf32>
    %89 = tpu.reciprocal %88 {approx = true} : vector<2x8x1xf32> -> vector<2x8x1xf32>
    %90 = vector.broadcast %89 : vector<2x8x1xf32> to vector<2x8x8xf32>
    %91 = arith.mulf %86, %90 : vector<2x8x8xf32>
    %92 = arith.truncf %91 : vector<2x8x8xf32> to vector<2x8x8xbf16>
    "tpu.trace_start"() <{level = 10 : i32, message = "bqk,bkd->bqd"}> : () -> ()
    %cst_42 = arith.constant dense<0.000000e+00> : vector<2x8x32xf32>
    %93 = tpu.matmul %92, %78, %cst_42 {dimension_numbers = #tpu.dot_dimension_numbers<[2], [1], [1], [2], [0, 0, 0, 1, 1, 2], [0], [0]>} : vector<2x8x8xbf16>, vector<2x8x32xbf16>, vector<2x8x32xf32> -> vector<2x8x32xf32>
    "tpu.trace_stop"() : () -> ()
    %94 = vector.shape_cast %93 : vector<2x8x32xf32> to vector<16x32xf32>
    %95 = arith.truncf %94 : vector<16x32xf32> to vector<16x32xbf16>
    %c1 = arith.constant 1 : index
    %c0_43 = arith.constant 0 : index
    %c0_44 = arith.constant 0 : index
    %96 = vector.load %arg11[%c1, %c0_43, %c0_44] : memref<4x32x128xbf16, #tpu.memory_space<vmem>>, vector<1x32x128xbf16>
    %97 = vector.shape_cast %96 : vector<1x32x128xbf16> to vector<32x128xbf16>
    %cst_45 = arith.constant dense<0.000000e+00> : vector<16x128xf32>
    %98 = tpu.matmul %95, %97, %cst_45 {dimension_numbers = #tpu.dot_dimension_numbers<[1], [0], [0], [1], [0, 0, 1, 1], [], []>} : vector<16x32xbf16>, vector<32x128xbf16>, vector<16x128xf32> -> vector<16x128xf32>
    %99 = arith.addf %75, %98 : vector<16x128xf32>
    %100 = vector.extract_strided_slice %48 {offsets = [0, 0, 64], sizes = [2, 8, 32], strides = [1, 1, 1]} : vector<2x8x128xbf16> to vector<2x8x32xbf16>
    %101 = vector.extract_strided_slice %50 {offsets = [0, 0, 64], sizes = [2, 8, 32], strides = [1, 1, 1]} : vector<2x8x128xbf16> to vector<2x8x32xbf16>
    %102 = vector.extract_strided_slice %52 {offsets = [0, 0, 64], sizes = [2, 8, 32], strides = [1, 1, 1]} : vector<2x8x128xbf16> to vector<2x8x32xbf16>
    "tpu.trace_start"() <{level = 10 : i32, message = "bqd,bkd->bqk"}> : () -> ()
    %cst_46 = arith.constant dense<0.000000e+00> : vector<2x8x8xf32>
    %103 = tpu.matmul %100, %101, %cst_46 {dimension_numbers = #tpu.dot_dimension_numbers<[2], [2], [1], [1], [0, 0, 0, 1, 1, 1], [0], [0]>} : vector<2x8x32xbf16>, vector<2x8x32xbf16>, vector<2x8x8xf32> -> vector<2x8x8xf32>
    "tpu.trace_stop"() : () -> ()
    %104 = vector.broadcast %6 : vector<2x1x8xf32> to vector<2x8x8xf32>
    %105 = arith.addf %103, %104 : vector<2x8x8xf32>
    %cst_47 = arith.constant dense<0xFF800000> : vector<2x8xf32>
    %106 = vector.multi_reduction <maximumf>, %105, %cst_47 [2] : vector<2x8x8xf32> to vector<2x8xf32>
    %107 = vector.shape_cast %106 : vector<2x8xf32> to vector<2x8x1xf32>
    %108 = vector.broadcast %107 : vector<2x8x1xf32> to vector<2x8x8xf32>
    %109 = arith.subf %105, %108 : vector<2x8x8xf32>
    %110 = math.exp %109 : vector<2x8x8xf32>
    %cst_48 = arith.constant dense<0.000000e+00> : vector<2x8xf32>
    %111 = vector.multi_reduction <add>, %110, %cst_48 [2] : vector<2x8x8xf32> to vector<2x8xf32>
    %112 = vector.shape_cast %111 : vector<2x8xf32> to vector<2x8x1xf32>
    %113 = tpu.reciprocal %112 {approx = true} : vector<2x8x1xf32> -> vector<2x8x1xf32>
    %114 = vector.broadcast %113 : vector<2x8x1xf32> to vector<2x8x8xf32>
    %115 = arith.mulf %110, %114 : vector<2x8x8xf32>
    %116 = arith.truncf %115 : vector<2x8x8xf32> to vector<2x8x8xbf16>
    "tpu.trace_start"() <{level = 10 : i32, message = "bqk,bkd->bqd"}> : () -> ()
    %cst_49 = arith.constant dense<0.000000e+00> : vector<2x8x32xf32>
    %117 = tpu.matmul %116, %102, %cst_49 {dimension_numbers = #tpu.dot_dimension_numbers<[2], [1], [1], [2], [0, 0, 0, 1, 1, 2], [0], [0]>} : vector<2x8x8xbf16>, vector<2x8x32xbf16>, vector<2x8x32xf32> -> vector<2x8x32xf32>
    "tpu.trace_stop"() : () -> ()
    %118 = vector.shape_cast %117 : vector<2x8x32xf32> to vector<16x32xf32>
    %119 = arith.truncf %118 : vector<16x32xf32> to vector<16x32xbf16>
    %c2 = arith.constant 2 : index
    %c0_50 = arith.constant 0 : index
    %c0_51 = arith.constant 0 : index
    %120 = vector.load %arg11[%c2, %c0_50, %c0_51] : memref<4x32x128xbf16, #tpu.memory_space<vmem>>, vector<1x32x128xbf16>
    %121 = vector.shape_cast %120 : vector<1x32x128xbf16> to vector<32x128xbf16>
    %cst_52 = arith.constant dense<0.000000e+00> : vector<16x128xf32>
    %122 = tpu.matmul %119, %121, %cst_52 {dimension_numbers = #tpu.dot_dimension_numbers<[1], [0], [0], [1], [0, 0, 1, 1], [], []>} : vector<16x32xbf16>, vector<32x128xbf16>, vector<16x128xf32> -> vector<16x128xf32>
    %123 = arith.addf %99, %122 : vector<16x128xf32>
    %124 = vector.extract_strided_slice %48 {offsets = [0, 0, 96], sizes = [2, 8, 32], strides = [1, 1, 1]} : vector<2x8x128xbf16> to vector<2x8x32xbf16>
    %125 = vector.extract_strided_slice %50 {offsets = [0, 0, 96], sizes = [2, 8, 32], strides = [1, 1, 1]} : vector<2x8x128xbf16> to vector<2x8x32xbf16>
    %126 = vector.extract_strided_slice %52 {offsets = [0, 0, 96], sizes = [2, 8, 32], strides = [1, 1, 1]} : vector<2x8x128xbf16> to vector<2x8x32xbf16>
    "tpu.trace_start"() <{level = 10 : i32, message = "bqd,bkd->bqk"}> : () -> ()
    %cst_53 = arith.constant dense<0.000000e+00> : vector<2x8x8xf32>
    %127 = tpu.matmul %124, %125, %cst_53 {dimension_numbers = #tpu.dot_dimension_numbers<[2], [2], [1], [1], [0, 0, 0, 1, 1, 1], [0], [0]>} : vector<2x8x32xbf16>, vector<2x8x32xbf16>, vector<2x8x8xf32> -> vector<2x8x8xf32>
    "tpu.trace_stop"() : () -> ()
    %128 = vector.broadcast %6 : vector<2x1x8xf32> to vector<2x8x8xf32>
    %129 = arith.addf %127, %128 : vector<2x8x8xf32>
    %cst_54 = arith.constant dense<0xFF800000> : vector<2x8xf32>
    %130 = vector.multi_reduction <maximumf>, %129, %cst_54 [2] : vector<2x8x8xf32> to vector<2x8xf32>
    %131 = vector.shape_cast %130 : vector<2x8xf32> to vector<2x8x1xf32>
    %132 = vector.broadcast %131 : vector<2x8x1xf32> to vector<2x8x8xf32>
    %133 = arith.subf %129, %132 : vector<2x8x8xf32>
    %134 = math.exp %133 : vector<2x8x8xf32>
    %cst_55 = arith.constant dense<0.000000e+00> : vector<2x8xf32>
    %135 = vector.multi_reduction <add>, %134, %cst_55 [2] : vector<2x8x8xf32> to vector<2x8xf32>
    %136 = vector.shape_cast %135 : vector<2x8xf32> to vector<2x8x1xf32>
    %137 = tpu.reciprocal %136 {approx = true} : vector<2x8x1xf32> -> vector<2x8x1xf32>
    %138 = vector.broadcast %137 : vector<2x8x1xf32> to vector<2x8x8xf32>
    %139 = arith.mulf %134, %138 : vector<2x8x8xf32>
    %140 = arith.truncf %139 : vector<2x8x8xf32> to vector<2x8x8xbf16>
    "tpu.trace_start"() <{level = 10 : i32, message = "bqk,bkd->bqd"}> : () -> ()
    %cst_56 = arith.constant dense<0.000000e+00> : vector<2x8x32xf32>
    %141 = tpu.matmul %140, %126, %cst_56 {dimension_numbers = #tpu.dot_dimension_numbers<[2], [1], [1], [2], [0, 0, 0, 1, 1, 2], [0], [0]>} : vector<2x8x8xbf16>, vector<2x8x32xbf16>, vector<2x8x32xf32> -> vector<2x8x32xf32>
    "tpu.trace_stop"() : () -> ()
    %142 = vector.shape_cast %141 : vector<2x8x32xf32> to vector<16x32xf32>
    %143 = arith.truncf %142 : vector<16x32xf32> to vector<16x32xbf16>
    %c3 = arith.constant 3 : index
    %c0_57 = arith.constant 0 : index
    %c0_58 = arith.constant 0 : index
    %144 = vector.load %arg11[%c3, %c0_57, %c0_58] : memref<4x32x128xbf16, #tpu.memory_space<vmem>>, vector<1x32x128xbf16>
    %145 = vector.shape_cast %144 : vector<1x32x128xbf16> to vector<32x128xbf16>
    %cst_59 = arith.constant dense<0.000000e+00> : vector<16x128xf32>
    %146 = tpu.matmul %143, %145, %cst_59 {dimension_numbers = #tpu.dot_dimension_numbers<[1], [0], [0], [1], [0, 0, 1, 1], [], []>} : vector<16x32xbf16>, vector<32x128xbf16>, vector<16x128xf32> -> vector<16x128xf32>
    %147 = arith.addf %123, %146 : vector<16x128xf32>
    %148 = arith.addf %1, %147 : vector<16x128xf32>
    %c0_60 = arith.constant 0 : index
    %c0_61 = arith.constant 0 : index
    %149 = vector.load %arg12[%c0_60, %c0_61] : memref<1x128xf32, #tpu.memory_space<vmem>>, vector<1x128xf32>
    %150 = vector.broadcast %149 : vector<1x128xf32> to vector<16x128xf32>
    %151 = arith.addf %148, %150 : vector<16x128xf32>
    %c0_62 = arith.constant 0 : index
    %c0_63 = arith.constant 0 : index
    %152 = vector.load %arg13[%c0_62, %c0_63] : memref<1x128xf32, #tpu.memory_space<vmem>>, vector<1x128xf32>
    %c0_64 = arith.constant 0 : index
    %c0_65 = arith.constant 0 : index
    %153 = vector.load %arg14[%c0_64, %c0_65] : memref<1x128xf32, #tpu.memory_space<vmem>>, vector<1x128xf32>
    %cst_66 = arith.constant dense<0.000000e+00> : vector<16xf32>
    %154 = vector.multi_reduction <add>, %151, %cst_66 [1] : vector<16x128xf32> to vector<16xf32>
    %155 = vector.shape_cast %154 : vector<16xf32> to vector<16x1xf32>
    %cst_67 = arith.constant 1.280000e+02 : f32
    %156 = vector.broadcast %cst_67 : f32 to vector<16x1xf32>
    %157 = arith.divf %155, %156 : vector<16x1xf32>
    %158 = vector.broadcast %157 : vector<16x1xf32> to vector<16x128xf32>
    %159 = arith.subf %151, %158 : vector<16x128xf32>
    %160 = arith.mulf %159, %159 : vector<16x128xf32>
    %cst_68 = arith.constant dense<0.000000e+00> : vector<16xf32>
    %161 = vector.multi_reduction <add>, %160, %cst_68 [1] : vector<16x128xf32> to vector<16xf32>
    %162 = vector.shape_cast %161 : vector<16xf32> to vector<16x1xf32>
    %cst_69 = arith.constant 1.280000e+02 : f32
    %163 = vector.broadcast %cst_69 : f32 to vector<16x1xf32>
    %164 = arith.divf %162, %163 : vector<16x1xf32>
    %cst_70 = arith.constant 9.99999974E-6 : f32
    %165 = vector.broadcast %cst_70 : f32 to vector<16x1xf32>
    %166 = arith.addf %164, %165 : vector<16x1xf32>
    %167 = math.rsqrt %166 : vector<16x1xf32>
    %168 = vector.broadcast %167 : vector<16x1xf32> to vector<16x128xf32>
    %169 = arith.mulf %159, %168 : vector<16x128xf32>
    %170 = vector.broadcast %152 : vector<1x128xf32> to vector<16x128xf32>
    %171 = arith.mulf %169, %170 : vector<16x128xf32>
    %172 = vector.broadcast %153 : vector<1x128xf32> to vector<16x128xf32>
    %173 = arith.addf %171, %172 : vector<16x128xf32>
    %174 = arith.truncf %173 : vector<16x128xf32> to vector<16x128xbf16>
    %c0_71 = arith.constant 0 : index
    %c0_72 = arith.constant 0 : index
    %175 = vector.load %arg15[%c0_71, %c0_72] : memref<128x256xbf16, #tpu.memory_space<vmem>>, vector<128x256xbf16>
    %cst_73 = arith.constant dense<0.000000e+00> : vector<16x256xf32>
    %176 = tpu.matmul %174, %175, %cst_73 {dimension_numbers = #tpu.dot_dimension_numbers<[1], [0], [0], [1], [0, 0, 1, 1], [], []>} : vector<16x128xbf16>, vector<128x256xbf16>, vector<16x256xf32> -> vector<16x256xf32>
    %c0_74 = arith.constant 0 : index
    %c0_75 = arith.constant 0 : index
    %177 = vector.load %arg16[%c0_74, %c0_75] : memref<1x256xf32, #tpu.memory_space<vmem>>, vector<1x256xf32>
    %178 = vector.broadcast %177 : vector<1x256xf32> to vector<16x256xf32>
    %179 = arith.addf %176, %178 : vector<16x256xf32>
    %cst_76 = arith.constant 0.000000e+00 : f32
    %180 = vector.broadcast %cst_76 : f32 to vector<16x256xf32>
    %181 = arith.maximumf %179, %180 : vector<16x256xf32>
    %182 = arith.truncf %181 : vector<16x256xf32> to vector<16x256xbf16>
    %c0_77 = arith.constant 0 : index
    %c0_78 = arith.constant 0 : index
    %183 = vector.load %arg17[%c0_77, %c0_78] : memref<256x128xbf16, #tpu.memory_space<vmem>>, vector<256x128xbf16>
    %cst_79 = arith.constant dense<0.000000e+00> : vector<16x128xf32>
    %184 = tpu.matmul %182, %183, %cst_79 {dimension_numbers = #tpu.dot_dimension_numbers<[1], [0], [0], [1], [0, 0, 1, 1], [], []>} : vector<16x256xbf16>, vector<256x128xbf16>, vector<16x128xf32> -> vector<16x128xf32>
    %c0_80 = arith.constant 0 : index
    %c0_81 = arith.constant 0 : index
    %185 = vector.load %arg18[%c0_80, %c0_81] : memref<1x128xf32, #tpu.memory_space<vmem>>, vector<1x128xf32>
    %186 = vector.broadcast %185 : vector<1x128xf32> to vector<16x128xf32>
    %187 = arith.addf %184, %186 : vector<16x128xf32>
    %188 = arith.addf %151, %187 : vector<16x128xf32>
    %c0_82 = arith.constant 0 : index
    %c0_83 = arith.constant 0 : index
    %189 = vector.load %arg19[%c0_82, %c0_83] : memref<1x128xf32, #tpu.memory_space<vmem>>, vector<1x128xf32>
    %c0_84 = arith.constant 0 : index
    %c0_85 = arith.constant 0 : index
    %190 = vector.load %arg20[%c0_84, %c0_85] : memref<1x128xf32, #tpu.memory_space<vmem>>, vector<1x128xf32>
    %cst_86 = arith.constant dense<0.000000e+00> : vector<16xf32>
    %191 = vector.multi_reduction <add>, %188, %cst_86 [1] : vector<16x128xf32> to vector<16xf32>
    %192 = vector.shape_cast %191 : vector<16xf32> to vector<16x1xf32>
    %cst_87 = arith.constant 1.280000e+02 : f32
    %193 = vector.broadcast %cst_87 : f32 to vector<16x1xf32>
    %194 = arith.divf %192, %193 : vector<16x1xf32>
    %195 = vector.broadcast %194 : vector<16x1xf32> to vector<16x128xf32>
    %196 = arith.subf %188, %195 : vector<16x128xf32>
    %197 = arith.mulf %196, %196 : vector<16x128xf32>
    %cst_88 = arith.constant dense<0.000000e+00> : vector<16xf32>
    %198 = vector.multi_reduction <add>, %197, %cst_88 [1] : vector<16x128xf32> to vector<16xf32>
    %199 = vector.shape_cast %198 : vector<16xf32> to vector<16x1xf32>
    %cst_89 = arith.constant 1.280000e+02 : f32
    %200 = vector.broadcast %cst_89 : f32 to vector<16x1xf32>
    %201 = arith.divf %199, %200 : vector<16x1xf32>
    %cst_90 = arith.constant 9.99999974E-6 : f32
    %202 = vector.broadcast %cst_90 : f32 to vector<16x1xf32>
    %203 = arith.addf %201, %202 : vector<16x1xf32>
    %204 = math.rsqrt %203 : vector<16x1xf32>
    %205 = vector.broadcast %204 : vector<16x1xf32> to vector<16x128xf32>
    %206 = arith.mulf %196, %205 : vector<16x128xf32>
    %207 = vector.broadcast %189 : vector<1x128xf32> to vector<16x128xf32>
    %208 = arith.mulf %206, %207 : vector<16x128xf32>
    %209 = vector.broadcast %190 : vector<1x128xf32> to vector<16x128xf32>
    %210 = arith.addf %208, %209 : vector<16x128xf32>
    %211 = arith.truncf %210 : vector<16x128xf32> to vector<16x128xbf16>
    %c0_91 = arith.constant 0 : index
    %c0_92 = arith.constant 0 : index
    %212 = vector.load %arg21[%c0_91, %c0_92] : memref<128x32xbf16, #tpu.memory_space<vmem>>, vector<128x32xbf16>
    %cst_93 = arith.constant dense<0.000000e+00> : vector<16x32xf32>
    %213 = tpu.matmul %211, %212, %cst_93 {dimension_numbers = #tpu.dot_dimension_numbers<[1], [0], [0], [1], [0, 0, 1, 1], [], []>} : vector<16x128xbf16>, vector<128x32xbf16>, vector<16x32xf32> -> vector<16x32xf32>
    %c0_94 = arith.constant 0 : index
    %c0_95 = arith.constant 0 : index
    %214 = vector.load %arg22[%c0_94, %c0_95] : memref<1x32xf32, #tpu.memory_space<vmem>>, vector<1x32xf32>
    %215 = vector.broadcast %214 : vector<1x32xf32> to vector<16x32xf32>
    %216 = arith.addf %213, %215 : vector<16x32xf32>
    %cst_96 = arith.constant 0.000000e+00 : f32
    %217 = vector.broadcast %cst_96 : f32 to vector<16x32xf32>
    %218 = arith.maximumf %216, %217 : vector<16x32xf32>
    %219 = arith.truncf %218 : vector<16x32xf32> to vector<16x32xbf16>
    %c0_97 = arith.constant 0 : index
    %c0_98 = arith.constant 0 : index
    %220 = vector.load %arg23[%c0_97, %c0_98] : memref<32x128xbf16, #tpu.memory_space<vmem>>, vector<32x128xbf16>
    %cst_99 = arith.constant dense<0.000000e+00> : vector<16x128xf32>
    %221 = tpu.matmul %219, %220, %cst_99 {dimension_numbers = #tpu.dot_dimension_numbers<[1], [0], [0], [1], [0, 0, 1, 1], [], []>} : vector<16x32xbf16>, vector<32x128xbf16>, vector<16x128xf32> -> vector<16x128xf32>
    %c0_100 = arith.constant 0 : index
    %c0_101 = arith.constant 0 : index
    %222 = vector.load %arg24[%c0_100, %c0_101] : memref<1x128xf32, #tpu.memory_space<vmem>>, vector<1x128xf32>
    %223 = vector.broadcast %222 : vector<1x128xf32> to vector<16x128xf32>
    %224 = arith.addf %221, %223 : vector<16x128xf32>
    %225 = arith.addf %188, %224 : vector<16x128xf32>
    %226 = vector.shape_cast %225 : vector<16x128xf32> to vector<2x8x128xf32>
    %c0_102 = arith.constant 0 : index
    %c0_103 = arith.constant 0 : index
    %c0_104 = arith.constant 0 : index
    %227 = vector.load %arg25[%c0_102, %c0_103, %c0_104] : memref<2x8x128xf32, #tpu.memory_space<vmem>>, vector<2x8x128xf32>
    tpu.vector_store %arg25[%c0_102, %c0_103, %c0_104], %226 {strides = array<i32>} : memref<2x8x128xf32, #tpu.memory_space<vmem>>, vector<2x8x128xf32>,
    return
  }
  func.func @transform_0(%arg0: i32) -> (i32, i32, i32) {
    %c0_i32 = arith.constant 0 : i32
    %c0_i32_0 = arith.constant 0 : i32
    %c0_i32_1 = arith.constant 0 : i32
    return %arg0, %c0_i32, %c0_i32_0 : i32, i32, i32
  }
  func.func @transform_1(%arg0: i32) -> (i32, i32, i32) {
    %c0_i32 = arith.constant 0 : i32
    %c0_i32_0 = arith.constant 0 : i32
    %c0_i32_1 = arith.constant 0 : i32
    return %arg0, %c0_i32, %c0_i32_0 : i32, i32, i32
  }
  func.func @transform_2(%arg0: i32) -> (i32, i32) {
    %c0_i32 = arith.constant 0 : i32
    %c0_i32_0 = arith.constant 0 : i32
    %c0_i32_1 = arith.constant 0 : i32
    return %c0_i32, %c0_i32_0 : i32, i32
  }
  func.func @transform_3(%arg0: i32) -> (i32, i32) {
    %c0_i32 = arith.constant 0 : i32
    %c0_i32_0 = arith.constant 0 : i32
    %c0_i32_1 = arith.constant 0 : i32
    return %c0_i32, %c0_i32_0 : i32, i32
  }
  func.func @transform_4(%arg0: i32) -> (i32, i32) {
    %c0_i32 = arith.constant 0 : i32
    %c0_i32_0 = arith.constant 0 : i32
    %c0_i32_1 = arith.constant 0 : i32
    return %c0_i32, %c0_i32_0 : i32, i32
  }
  func.func @transform_5(%arg0: i32) -> (i32, i32) {
    %c0_i32 = arith.constant 0 : i32
    %c0_i32_0 = arith.constant 0 : i32
    %c0_i32_1 = arith.constant 0 : i32
    return %c0_i32, %c0_i32_0 : i32, i32
  }
  func.func @transform_6(%arg0: i32) -> (i32, i32) {
    %c0_i32 = arith.constant 0 : i32
    %c0_i32_0 = arith.constant 0 : i32
    %c0_i32_1 = arith.constant 0 : i32
    return %c0_i32, %c0_i32_0 : i32, i32
  }
  func.func @transform_7(%arg0: i32) -> (i32, i32) {
    %c0_i32 = arith.constant 0 : i32
    %c0_i32_0 = arith.constant 0 : i32
    %c0_i32_1 = arith.constant 0 : i32
    return %c0_i32, %c0_i32_0 : i32, i32
  }
  func.func @transform_8(%arg0: i32) -> (i32, i32) {
    %c0_i32 = arith.constant 0 : i32
    %c0_i32_0 = arith.constant 0 : i32
    %c0_i32_1 = arith.constant 0 : i32
    return %c0_i32, %c0_i32_0 : i32, i32
  }
  func.func @transform_9(%arg0: i32) -> (i32, i32) {
    %c0_i32 = arith.constant 0 : i32
    %c0_i32_0 = arith.constant 0 : i32
    %c0_i32_1 = arith.constant 0 : i32
    return %c0_i32, %c0_i32_0 : i32, i32
  }
  func.func @transform_10(%arg0: i32) -> (i32, i32, i32) {
    %c0_i32 = arith.constant 0 : i32
    %c0_i32_0 = arith.constant 0 : i32
    %c0_i32_1 = arith.constant 0 : i32
    %c0_i32_2 = arith.constant 0 : i32
    return %c0_i32, %c0_i32_0, %c0_i32_1 : i32, i32, i32
  }
  func.func @transform_11(%arg0: i32) -> (i32, i32) {
    %c0_i32 = arith.constant 0 : i32
    %c0_i32_0 = arith.constant 0 : i32
    %c0_i32_1 = arith.constant 0 : i32
    return %c0_i32, %c0_i32_0 : i32, i32
  }
  func.func @transform_12(%arg0: i32) -> (i32, i32) {
    %c0_i32 = arith.constant 0 : i32
    %c0_i32_0 = arith.constant 0 : i32
    %c0_i32_1 = arith.constant 0 : i32
    return %c0_i32, %c0_i32_0 : i32, i32
  }
  func.func @transform_13(%arg0: i32) -> (i32, i32) {
    %c0_i32 = arith.constant 0 : i32
    %c0_i32_0 = arith.constant 0 : i32
    %c0_i32_1 = arith.constant 0 : i32
    return %c0_i32, %c0_i32_0 : i32, i32
  }
  func.func @transform_14(%arg0: i32) -> (i32, i32) {
    %c0_i32 = arith.constant 0 : i32
    %c0_i32_0 = arith.constant 0 : i32
    %c0_i32_1 = arith.constant 0 : i32
    return %c0_i32, %c0_i32_0 : i32, i32
  }
  func.func @transform_15(%arg0: i32) -> (i32, i32) {
    %c0_i32 = arith.constant 0 : i32
    %c0_i32_0 = arith.constant 0 : i32
    %c0_i32_1 = arith.constant 0 : i32
    return %c0_i32, %c0_i32_0 : i32, i32
  }
  func.func @transform_16(%arg0: i32) -> (i32, i32) {
    %c0_i32 = arith.constant 0 : i32
    %c0_i32_0 = arith.constant 0 : i32
    %c0_i32_1 = arith.constant 0 : i32
    return %c0_i32, %c0_i32_0 : i32, i32
  }
  func.func @transform_17(%arg0: i32) -> (i32, i32) {
    %c0_i32 = arith.constant 0 : i32
    %c0_i32_0 = arith.constant 0 : i32
    %c0_i32_1 = arith.constant 0 : i32
    return %c0_i32, %c0_i32_0 : i32, i32
  }
  func.func @transform_18(%arg0: i32) -> (i32, i32) {
    %c0_i32 = arith.constant 0 : i32
    %c0_i32_0 = arith.constant 0 : i32
    %c0_i32_1 = arith.constant 0 : i32
    return %c0_i32, %c0_i32_0 : i32, i32
  }
  func.func @transform_19(%arg0: i32) -> (i32, i32) {
    %c0_i32 = arith.constant 0 : i32
    %c0_i32_0 = arith.constant 0 : i32
    %c0_i32_1 = arith.constant 0 : i32
    return %c0_i32, %c0_i32_0 : i32, i32
  }
  func.func @transform_20(%arg0: i32) -> (i32, i32) {
    %c0_i32 = arith.constant 0 : i32
    %c0_i32_0 = arith.constant 0 : i32
    %c0_i32_1 = arith.constant 0 : i32
    return %c0_i32, %c0_i32_0 : i32, i32
  }
  func.func @transform_21(%arg0: i32) -> (i32, i32) {
    %c0_i32 = arith.constant 0 : i32
    %c0_i32_0 = arith.constant 0 : i32
    %c0_i32_1 = arith.constant 0 : i32
    return %c0_i32, %c0_i32_0 : i32, i32
  }
  func.func @transform_22(%arg0: i32) -> (i32, i32) {
    %c0_i32 = arith.constant 0 : i32
    %c0_i32_0 = arith.constant 0 : i32
    %c0_i32_1 = arith.constant 0 : i32
    return %c0_i32, %c0_i32_0 : i32, i32
  }
  func.func @transform_23(%arg0: i32) -> (i32, i32) {
    %c0_i32 = arith.constant 0 : i32
    %c0_i32_0 = arith.constant 0 : i32
    %c0_i32_1 = arith.constant 0 : i32
    return %c0_i32, %c0_i32_0 : i32, i32
  }
  func.func @transform_24(%arg0: i32) -> (i32, i32, i32) {
    %c0_i32 = arith.constant 0 : i32
    %c0_i32_0 = arith.constant 0 : i32
    %c0_i32_1 = arith.constant 0 : i32
    return %arg0, %c0_i32, %c0_i32_0 : i32, i32, i32
  }
}

</mosaic_0001>

<bundles_post_ra>
// kernel: tpu_custom_call.1
= control target key start
LH: loop header
LB: loop body
LE: loop exit
PB: predicated region body
PF: predicated region fallthrough
CT: control target
= control target key end

     0   :  { %s3264_s0 = inlined_call_operand.vmem [shape: f32[2,8,128], index: 0, kind: input, shape index: {}]   ;;  %s3265_s1 = inlined_call_operand.vmem [shape: f32[2,1,8], index: 1, kind: input, shape index: {}]   ;;  %s3266_s2 = inlined_call_operand.vmem [shape: f32[1,128], index: 2, kind: input, shape index: {}]   ;;  %s3267_s3 = inlined_call_operand.hbm [shape: f32[1,128], index: 3, kind: input, shape index: {}]   ;;  %s3268_s4 = inlined_call_operand.vmem [shape: bf16[128,128], index: 4, kind: input, shape index: {}]   ;;  %s3269_s5 = inlined_call_operand.hbm [shape: f32[1,128], index: 5, kind: input, shape index: {}]   ;;  %s3270_s6 = inlined_call_operand.hbm [shape: bf16[128,128], index: 6, kind: input, shape index: {}]   ;;  %s3271_s7 = inlined_call_operand.hbm [shape: f32[1,128], index: 7, kind: input, shape index: {}]   ;;  %s3272_s8 = inlined_call_operand.hbm [shape: bf16[128,128], index: 8, kind: input, shape index: {}]   ;;  %s3273_s9 = inlined_call_operand.hbm [shape: f32[1,128], index: 9, kind: input, shape index: {}]   ;;  %s3274_s10 = inlined_call_operand.hbm [shape: bf16[4,32,128], index: 10, kind: input, shape index: {}]   ;;  %s3275_s11 = inlined_call_operand.hbm [shape: f32[1,128], index: 11, kind: input, shape index: {}]   ;;  %s3276_s12 = inlined_call_operand.hbm [shape: f32[1,128], index: 12, kind: input, shape index: {}]   ;;  %s3277_s13 = inlined_call_operand.hbm [shape: f32[1,128], index: 13, kind: input, shape index: {}]   ;;  %s3278_s14 = inlined_call_operand.hbm [shape: bf16[128,256], index: 14, kind: input, shape index: {}]   ;;  %s3279_s15 = inlined_call_operand.hbm [shape: f32[1,256], index: 15, kind: input, shape index: {}]   ;;  %s3280_s16 = inlined_call_operand.hbm [shape: bf16[256,128], index: 16, kind: input, shape index: {}]   ;;  %s3281_s17 = inlined_call_operand.hbm [shape: f32[1,128], index: 17, kind: input, shape index: {}]   ;;  %s3282_s18 = inlined_call_operand.hbm [shape: f32[1,128], index: 18, kind: input, shape index: {}]   ;;  %s3283_s19 = inlined_call_operand.hbm [shape: f32[1,128], index: 19, kind: input, shape index: {}]   ;;  %s3284_s20 = inlined_call_operand.vmem [shape: bf16[128,32], index: 20, kind: input, shape index: {}]   ;;  %s3285_s21 = inlined_call_operand.hbm [shape: f32[1,32], index: 21, kind: input, shape index: {}]   ;;  %s3286_s22 = inlined_call_operand.hbm [shape: bf16[32,128], index: 22, kind: input, shape index: {}]   ;;  %s3287_s23 = inlined_call_operand.vmem [shape: f32[1,128], index: 23, kind: input, shape index: {}]   ;;  %s3288_s24 = inlined_call_operand.hbm [shape: f32[2,8,128], index: 24, kind: output, shape index: {}]  }
   0x1   :  { %3292 = sst [smem:[#allocation43_spill]] %s3264_s0 }
   0x2   :  { %3293 = sst [smem:[#allocation44_spill]] %s3265_s1 }
   0x3   :  { %3294 = sst [smem:[#allocation45_spill]] %s3266_s2 }
   0x4   :  { %3295 = sst [smem:[#allocation46_spill]] %s3267_s3 }
   0x5   :  { %3296 = sst [smem:[#allocation47_spill]] %s3268_s4 }
   0x6   :  { %3297 = sst [smem:[#allocation48_spill]] %s3269_s5 }
   0x7   :  { %3298 = sst [smem:[#allocation49_spill]] %s3270_s6 }
   0x8   :  { %3299 = sst [smem:[#allocation50_spill]] %s3271_s7 }
   0x9   :  { %3300 = sst [smem:[#allocation51_spill]] %s3272_s8 }
   0xa   :  { %3301 = sst [smem:[#allocation52_spill]] %s3288_s24 }
   0xb   :  { %29 = vsyncpa [#allocation3], 0 }
   0xc   :  { %30 = vsyncpa [#allocation6], 0 }
   0xd   :  { %31 = vsyncpa [#allocation9], 0 }
   0xe   :  { %32 = vsyncpa [#allocation12], 0 }
   0xf   :  { %33 = vsyncpa [#allocation15], 0 }
  0x10   :  { %34 = vsyncpa [#allocation18], 0 }
  0x11   :  { %35 = vsyncpa [#allocation21], 0 }
  0x12   :  { %36 = vsyncpa [#allocation24], 0 }
  0x13   :  { %37 = vsyncpa [#allocation27], 0 }
  0x14   :  { %38 = vsyncpa [#allocation30], 0  ;;  %s3302_s27 = sld [smem:[#allocation48_spill]] }
  0x1a   :  { %s64_s28 = sshll.u32 %s3302_s27, 4  ;;  %s65_s28 = int_to_ptr.hbm [resolvable:$true] %s64_s28 }
  0x1b   :  { %39 = vsyncpa [#allocation4], 0  ;;  %s2785_s6 = smov [#allocation5]   ;;  %s3303_s7 = sld [smem:[#allocation50_spill]] }
  0x1c   :  { %s66_s2 = sshll.u32 %s2785_s6, 4  ;;  %s2786_s3 = smov [#allocation8]   ;;  %s67_s2 = int_to_ptr.vmem [resolvable:$true] %s66_s2 }
  0x1d   :  { %69 = dma.hbm_to_vmem [thread:$0]  %s65_s28, 16, %s67_s2, [#allocation6]  }
  0x1e   :  { %s90_s25 = sshll.u32 %s2786_s3, 4  ;;  %s112_s1 = sshll.u32 %s3273_s9, 4  ;;  %s91_s25 = int_to_ptr.vmem [resolvable:$true] %s90_s25  ;;  %s113_s1 = int_to_ptr.hbm [resolvable:$true] %s112_s1 }
  0x1f   :  { %s136_s27 = sshll.u32 %s3275_s11, 4  ;;  %s2787_s6 = smov [#allocation11]   ;;  %s137_s27 = int_to_ptr.hbm [resolvable:$true] %s136_s27 }
  0x20   :  { %s114_s24 = sshll.u32 %s2787_s6, 4  ;;  %s2788_s28 = smov [#allocation14]   ;;  %s115_s24 = int_to_ptr.vmem [resolvable:$true] %s114_s24 }
  0x21   :  { %s88_s30 = sshll.u32 %s3303_s7, 4  ;;  %s138_s2 = sshll.u32 %s2788_s28, 4  ;;  %s89_s30 = int_to_ptr.hbm [resolvable:$true] %s88_s30  ;;  %s139_s2 = int_to_ptr.vmem [resolvable:$true] %s138_s2 }
  0x22   :  { %93 = dma.hbm_to_vmem [thread:$0]  %s89_s30, 16, %s91_s25, [#allocation9]  }
  0x23   :  { %117 = dma.hbm_to_vmem [thread:$0]  %s113_s1, 16, %s115_s24, [#allocation12]  }
  0x24   :  { %s158_s7 = sshll.u32 %s3277_s13, 4  ;;  %s182_s3 = sshll.u32 %s3279_s15, 4  ;;  %s159_s7 = int_to_ptr.hbm [resolvable:$true] %s158_s7  ;;  %s183_s3 = int_to_ptr.hbm [resolvable:$true] %s182_s3 }
  0x25   :  { %141 = dma.hbm_to_vmem [thread:$0]  %s137_s27, 16, %s139_s2, [#allocation15]  }
  0x26   :  { %s2789_s25 = smov [#allocation17]   ;;  %s2790_s8 = smov [#allocation20]  }
  0x27   :  { %s160_s11 = sshll.u32 %s2789_s25, 4  ;;  %s184_s24 = sshll.u32 %s2790_s8, 4  ;;  %s161_s11 = int_to_ptr.vmem [resolvable:$true] %s160_s11  ;;  %s185_s24 = int_to_ptr.vmem [resolvable:$true] %s184_s24 }
  0x28   :  { %163 = dma.hbm_to_vmem [thread:$0]  %s159_s7, 16, %s161_s11, [#allocation18]  }
  0x29   :  { %s206_s5 = sshll.u32 %s3281_s17, 4  ;;  %s228_s27 = sshll.u32 %s3283_s19, 4  ;;  %s207_s5 = int_to_ptr.hbm [resolvable:$true] %s206_s5  ;;  %s229_s27 = int_to_ptr.hbm [resolvable:$true] %s228_s27 }
  0x2a   :  { %187 = dma.hbm_to_vmem [thread:$0]  %s183_s3, 32, %s185_s24, [#allocation21]  }
  0x2b   :  { %s2791_s6 = smov [#allocation23]   ;;  %s2792_s28 = smov [#allocation26]  }
  0x2c   :  { %s208_s15 = sshll.u32 %s2791_s6, 4  ;;  %s230_s2 = sshll.u32 %s2792_s28, 4  ;;  %s209_s15 = int_to_ptr.vmem [resolvable:$true] %s208_s15  ;;  %s231_s2 = int_to_ptr.vmem [resolvable:$true] %s230_s2 }
  0x2d   :  { %211 = dma.hbm_to_vmem [thread:$0]  %s207_s5, 16, %s209_s15, [#allocation24]  }
  0x2e   :  { %s3304_s7 = sld [smem:[#allocation46_spill]]  ;;  %s2793_s11 = smov [#allocation2]  }
  0x2f   :  { %233 = dma.hbm_to_vmem [thread:$0]  %s229_s27, 16, %s231_s2, [#allocation27]  }
  0x30   :  { %s3305_s3 = sld [smem:[#allocation49_spill]]  ;;  %s53_s19 = sshll.u32 %s2793_s11, 4  ;;  %s54_s19 = int_to_ptr.vmem [resolvable:$true] %s53_s19 }
  0x31   :  { %s2794_s8 = smov [#allocation7]   ;;  %s2795_s4 = smov 64  }
  0x32   :  { %s76_s24 = sshll.u32 %s2794_s8, 4  ;;  %s2796_s1 = smov 4   ;;  %s77_s24 = int_to_ptr.vmem [resolvable:$true] %s76_s24 }
  0x33   :  { %s3306_s26 = sld [smem:[#allocation51_spill]]  ;;  %s2797_s6 = smov [#allocation10]  }
  0x34   :  { %s51_s9 = sshll.u32 %s3304_s7, 4  ;;  %s100_s15 = sshll.u32 %s2797_s6, 4  ;;  %s52_s9 = int_to_ptr.hbm [resolvable:$true] %s51_s9  ;;  %s101_s15 = int_to_ptr.vmem [resolvable:$true] %s100_s15 }
  0x35   :  { %56 = dma.hbm_to_vmem [thread:$0]  %s52_s9, 16, %s54_s19, [#allocation3]  }
  0x36   :  { %s74_s25 = sshll.u32 %s3305_s3, 4  ;;  %s122_s29 = sshll.u32 %s3274_s10, 4  ;;  %s75_s25 = int_to_ptr.hbm [resolvable:$true] %s74_s25  ;;  %s123_s29 = int_to_ptr.hbm [resolvable:$true] %s122_s29 }
  0x37   :  { %82 = dma.hbm_to_vmem [thread:$0]  %s75_s25, 1024, %s77_s24, [#allocation6], %s2795_s4, %s2795_s4, %s2796_s1  }
  0x38   :  { %s2798_s0 = smov [#allocation13]   ;;  %s147_s30 = sshll.u32 %s3276_s12, 4  ;;  %s148_s30 = int_to_ptr.hbm [resolvable:$true] %s147_s30 }
  0x39   :  { %s98_s27 = sshll.u32 %s3306_s26, 4  ;;  %s124_s7 = sshll.u32 %s2798_s0, 4  ;;  %s99_s27 = int_to_ptr.hbm [resolvable:$true] %s98_s27  ;;  %s125_s7 = int_to_ptr.vmem [resolvable:$true] %s124_s7 }
  0x3a   :  { %106 = dma.hbm_to_vmem [thread:$0]  %s99_s27, 1024, %s101_s15, [#allocation9], %s2795_s4, %s2795_s4, %s2796_s1  }
  0x3b   :  { %130 = dma.hbm_to_vmem [thread:$0]  %s123_s29, 1024, %s125_s7, [#allocation12], %s2795_s4, %s2795_s4, %s2796_s1  }
  0x3c   :  { %s168_s10 = sshll.u32 %s3278_s14, 4  ;;  %s2799_s11 = smov [#allocation16]   ;;  %s169_s10 = int_to_ptr.hbm [resolvable:$true] %s168_s10 }
  0x3d   :  { %s149_s19 = sshll.u32 %s2799_s11, 4  ;;  %s2800_s8 = smov [#allocation19]   ;;  %s150_s19 = int_to_ptr.vmem [resolvable:$true] %s149_s19 }
  0x3e   :  { %152 = dma.hbm_to_vmem [thread:$0]  %s148_s30, 16, %s150_s19, [#allocation15]  }
  0x3f   :  { %s170_s24 = sshll.u32 %s2800_s8, 4  ;;  %s2801_s5 = smov 128   ;;  %s171_s24 = int_to_ptr.vmem [resolvable:$true] %s170_s24 }
  0x40   :  { %s2802_s12 = smov 8   ;;  %s192_s27 = sshll.u32 %s3280_s16, 4  ;;  %s193_s27 = int_to_ptr.hbm [resolvable:$true] %s192_s27 }
  0x41   :  { %176 = dma.hbm_to_vmem [thread:$0]  %s169_s10, 2048, %s171_s24, [#allocation18], %s2801_s5, %s2801_s5, %s2802_s12  }
  0x42   :  { %s2803_s14 = smov [#allocation22]   ;;  %s217_s2 = sshll.u32 %s3282_s18, 4  ;;  %s218_s2 = int_to_ptr.hbm [resolvable:$true] %s217_s2 }
  0x43   :  { %s194_s6 = sshll.u32 %s2803_s14, 4  ;;  %s2804_s29 = smov [#allocation25]   ;;  %s195_s6 = int_to_ptr.vmem [resolvable:$true] %s194_s6 }
  0x44   :  { %200 = dma.hbm_to_vmem [thread:$0]  %s193_s27, 2048, %s195_s6, [#allocation21], %s2795_s4, %s2795_s4, %s2796_s1  }
  0x45   :  { %s219_s0 = sshll.u32 %s2804_s29, 4  ;;  %s241_s17 = sshll.u32 %s3285_s21, 4  ;;  %s220_s0 = int_to_ptr.vmem [resolvable:$true] %s219_s0  ;;  %s242_s17 = int_to_ptr.hbm [resolvable:$true] %s241_s17 }
  0x46   :  { %222 = dma.hbm_to_vmem [thread:$0]  %s218_s2, 16, %s220_s0, [#allocation24]  }
  0x47   :  { %s251_s3 = sshll.u32 %s3286_s22, 4  ;;  %s2805_s25 = smov [#allocation28]   ;;  %s252_s3 = int_to_ptr.hbm [resolvable:$true] %s251_s3 }
  0x48   :  { %s243_s18 = sshll.u32 %s2805_s25, 4  ;;  %s2806_s10 = smov [#allocation29]   ;;  %s244_s18 = int_to_ptr.vmem [resolvable:$true] %s243_s18 }
  0x49   :  { %246 = dma.hbm_to_vmem [thread:$0]  %s242_s17, 16, %s244_s18, [#allocation27]  }
  0x4a   :  { %s253_s11 = sshll.u32 %s2806_s10, 4  ;;  %s254_s11 = int_to_ptr.vmem [resolvable:$true] %s253_s11 }
  0x4b   :  { %259 = dma.hbm_to_vmem [thread:$0]  %s252_s3, 256, %s254_s11, [#allocation30], %s2795_s4, %s2795_s4, %s2796_s1  }
  0x4c   :  { %2763 = dma.done.wait [#allocation3], 16  }
  0x4d   :  { %2764 = vsyncadd [#allocation3], 4294967280 }
  0x4e   :  { %2765 = dma.done.wait [#allocation6], 1040  }
  0x4f   :  { %2766 = vsyncadd [#allocation6], 4294966256 }
  0x50   :  { %2767 = dma.done.wait [#allocation9], 1040  }
  0x51   :  { %2768 = vsyncadd [#allocation9], 4294966256 }
  0x52   :  { %2769 = dma.done.wait [#allocation12], 1040  }
  0x53   :  { %2770 = vsyncadd [#allocation12], 4294966256 }
  0x54   :  { %2771 = dma.done.wait [#allocation15], 32  }
  0x55   :  { %2772 = vsyncadd [#allocation15], 4294967264 }
  0x56   :  { %2773 = dma.done.wait [#allocation18], 2064  }
  0x57   :  { %2774 = vsyncadd [#allocation18], 4294965232 }
  0x58   :  { %2775 = dma.done.wait [#allocation21], 2080  }
  0x59   :  { %2776 = vsyncadd [#allocation21], 4294965216 }
  0x5a   :  { %2777 = dma.done.wait [#allocation24], 32  }
  0x5b   :  { %2778 = vsyncadd [#allocation24], 4294967264 }
  0x5c   :  { %2779 = dma.done.wait [#allocation27], 32  }
  0x5d   :  { %2780 = vsyncadd [#allocation27], 4294967264 }
  0x5e   :  { %2781 = dma.done.wait [#allocation30], 256  }
  0x5f   :  { %2782 = vsyncadd [#allocation30], 4294967040  ;;  %s3307_s1 = sld [smem:[#allocation43_spill]]  ;;  %v2807_v2 = vmov 128.0   ;;  %v2163_v18 = vld [vmem:[#allocation7 + $0x38] sm:$0xff]  ;;  %v2162_v21 = vld [vmem:[#allocation7 + $0x30] sm:$0xff] }
  0x60   :  { %2261 = vrcp.f32 %v2807_v2  ;;  %s3308_s26 = sld [smem:[#allocation47_spill]]  ;;  %v2171_v19 = vld [vmem:[#allocation10 + $0x38] sm:$0xff]  ;;  %553 = vmatpush.bf16.msra.mxu1 %v2163_v18  ;;  %v2170_v22 = vld [vmem:[#allocation10 + $0x30] sm:$0xff]  ;;  %v2161_v24 = vld [vmem:[#allocation7 + $0x28] sm:$0xff]  ;;  %vm663_vm7 = vcmask 261120   ;;  %s2808_s11 = smov 96  }
  0x61   :  { %635 = vmatpush.bf16.msra.mxu2 %v2171_v19  ;;  %v2169_v25 = vld [vmem:[#allocation10 + $0x28] sm:$0xff]  ;;  %v2160_v27 = vld [vmem:[#allocation7 + $0x20] sm:$0xff]  ;;  %v2159_v30 = vld [vmem:[#allocation7 + $0x18] sm:$0xff]  ;;  %s3309_s10 = sld [smem:[#allocation45_spill]]  ;;  %vm730_vm8 = vcmask 1043456   ;;  %vm702_vm9 = vcmask 64512  }
  0x62   :  { %v2168_v28 = vld [vmem:[#allocation10 + $0x20] sm:$0xff]  ;;  %v2167_v31 = vld [vmem:[#allocation10 + $0x18] sm:$0xff]  ;;  %v2158_v33 = vld [vmem:[#allocation7 + $0x10] sm:$0xff]  ;;  %s2809_s24 = smov 32   ;;  %s2810_s25 = smov [#allocation31]  }
  0x63   :  { %v2166_v34 = vld [vmem:[#allocation10 + $0x10] sm:$0xff]  ;;  %v2157_v36 = vld [vmem:[#allocation7 + $0x8] sm:$0xff]  ;;  %v2156_v40 = vld [vmem:[#allocation7] sm:$0xff]  ;;  %s1805_s18 = sshll.u32 %s2810_s25, 4  ;;  %s3311_s21 = sld [smem:[#allocation52_spill]]  ;;  %s1806_s18 = int_to_ptr.vmem [resolvable:$true] %s1805_s18 }
  0x64   :  { %554 = vmatpush.bf16.msra.mxu1 %v2162_v21  ;;  %v2165_v37 = vld [vmem:[#allocation10 + $0x8] sm:$0xff]  ;;  %v2164_v42 = vld [vmem:[#allocation10] sm:$0xff] }
  0x65   :  { %v3011_v0 = vld [vmem:[%s3307_s1] sm:$0xff]  ;;  %v3017_v1 = vld [vmem:[%s3307_s1 + $0x8] sm:$0xff]  ;;  %636 = vmatpush.bf16.msra.mxu2 %v2170_v22  ;;  %s3310_s1 = sld [smem:[#allocation44_spill]] }
  0x66   :  { %345 = vadd.xlane.f32.xlu0 %v3011_v0  ;;  %v2262_v3 = vpop.eup %2261  ;;  %v2155_v17 = vld [vmem:[%s3308_s26 + $0x38] sm:$0xff]  ;;  %v2154_v20 = vld [vmem:[%s3308_s26 + $0x30] sm:$0xff]  ;;  %v2153_v23 = vld [vmem:[%s3308_s26 + $0x28] sm:$0xff] }
  0x67   :  { %v350_v4 = vmul.f32 128.0, %v2262_v3  ;;  %vm354_vm0 = vweird.f32 %v2262_v3  ;;  %471 = vmatpush.bf16.msra.mxu0 %v2155_v17  ;;  %v2152_v26 = vld [vmem:[%s3308_s26 + $0x20] sm:$0xff]  ;;  %v2151_v29 = vld [vmem:[%s3308_s26 + $0x18] sm:$0xff]  ;;  %v2150_v32 = vld [vmem:[%s3308_s26 + $0x10] sm:$0xff] }
  0x68   :  { %555 = vmatpush.bf16.msra.mxu1 %v2161_v24  ;;  %v2149_v35 = vld [vmem:[%s3308_s26 + $0x8] sm:$0xff]  ;;  %v2148_v39 = vld [vmem:[%s3308_s26] sm:$0xff] }
  0x69   :  { %v351_v5 = vsub.f32 1.0, %v350_v4  ;;  %637 = vmatpush.bf16.msra.mxu2 %v2169_v25  ;;  %v2248_v60 = vld [vmem:[%s3309_s10] ss:$0 sm:$0xff]  ;;  %v2252_v18 = vld [vmem:[#allocation11] ss:$0 sm:$0xff]  ;;  %s1807_s22 = sshll.u32 %s3311_s21, 4  ;;  %s1808_s22 = int_to_ptr.hbm [resolvable:$true] %s1807_s22 }
  0x6b   :  { %v352_v6 = vmul.f32 %v2262_v3, %v351_v5  ;;  %472 = vmatpush.bf16.msra.mxu0 %v2154_v20 }
  0x6c   :  { %556 = vmatpush.bf16.msra.mxu1 %v2160_v27 }
  0x6d   :  { %v353_v7 = vadd.f32 %v2262_v3, %v352_v6  ;;  %638 = vmatpush.bf16.msra.mxu2 %v2168_v28 }
  0x6e   :  { %347 = vadd.xlane.f32.xlu0 %v3017_v1 }
  0x6f   :  { %v3020_v8 = vsel %vm354_vm0, %v2262_v3, %v353_v7  ;;  %473 = vmatpush.bf16.msra.mxu0 %v2153_v23  ;;  %v2249_v3 = vld [vmem:[#allocation2] ss:$0 sm:$0xff] }
  0x70   :  { %557 = vmatpush.bf16.msra.mxu1 %v2159_v30 }
  0x71   :  { %639 = vmatpush.bf16.msra.mxu2 %v2167_v31 }
  0x73   :  { %474 = vmatpush.bf16.msra.mxu0 %v2152_v26 }
  0x74   :  { %558 = vmatpush.bf16.msra.mxu1 %v2158_v33 }
  0x75   :  { %640 = vmatpush.bf16.msra.mxu2 %v2166_v34 }
  0x77   :  { %475 = vmatpush.bf16.msra.mxu0 %v2151_v29 }
  0x78   :  { %559 = vmatpush.bf16.msra.mxu1 %v2157_v36 }
  0x79   :  { %641 = vmatpush.bf16.msra.mxu2 %v2165_v37 }
  0x7b   :  { %476 = vmatpush.bf16.msra.mxu0 %v2150_v32 }
  0x7c   :  { %560 = vmatpush.bf16.msra.mxu1 %v2156_v40 }
  0x7d   :  { %642 = vmatpush.bf16.msra.mxu2 %v2164_v42 }
  0x7f   :  { %477 = vmatpush.bf16.msra.mxu0 %v2149_v35 }
  0x83   :  { %478 = vmatpush.bf16.msra.mxu0 %v2148_v39 }
  0xd9   :  { %v346_v9 = vpop.xlane.xlu0 %345 }
  0xda   :  { %v356_v10 = vmul.f32 %v3020_v8, %v346_v9  ;;  %v2250_v9 = vld [vmem:[#allocation5] ss:$0 sm:$0xff] }
  0xdc   :  { %v3024_v11 = vsub.f32 %v3011_v0, %v356_v10  ;;  %v2251_v10 = vld [vmem:[#allocation8] ss:$0 sm:$0xff] }
  0xde   :  { %v360_v12 = vmul.f32 %v3024_v11, %v3024_v11 }
  0xe0   :  { %362 = vadd.xlane.f32.xlu1 %v360_v12 }
  0xe1   :  { %v348_v13 = vpop.xlane.xlu0 %347 }
  0xe2   :  { %v357_v14 = vmul.f32 %v3020_v8, %v348_v13 }
  0xe4   :  { %v3030_v15 = vsub.f32 %v3017_v1, %v357_v14 }
  0xe6   :  { %v361_v16 = vmul.f32 %v3030_v15, %v3030_v15 }
  0xe8   :  { %364 = vadd.xlane.f32.xlu1 %v361_v16 }
 0x153   :  { %v363_v38 = vpop.xlane.xlu1 %362 }
 0x154   :  { %v366_v41 = vmul.f32 %v363_v38, %v3020_v8 }
 0x156   :  { %v368_v43 = vadd.f32 1e-05, %v366_v41 }
 0x158   :  { %2263 = vrsqrt.f32 %v368_v43  ;;  %vm376_vm2 = vweird.f32 %v368_v43 }
 0x15b   :  { %v365_v44 = vpop.xlane.xlu1 %364 }
 0x15c   :  { %v367_v45 = vmul.f32 %v365_v44, %v3020_v8 }
 0x15e   :  { %v2264_v46 = vpop.eup %2263  ;;  %v369_v47 = vadd.f32 1e-05, %v367_v45 }
 0x15f   :  { %v371_v48 = vmul.f32 %v2264_v46, %v368_v43  ;;  %vm377_vm1 = vweird.f32 %v2264_v46 }
 0x160   :  { %2265 = vrsqrt.f32 %v369_v47  ;;  %vm378_vm3 = vmor %vm376_vm2, %vm377_vm1  ;;  %vm386_vm5 = vweird.f32 %v369_v47 }
 0x161   :  { %v372_v49 = vmul.f32 %v2264_v46, %v371_v48 }
 0x163   :  { %v373_v50 = vmul.f32 0.5, %v372_v49 }
 0x165   :  { %v374_v51 = vsub.f32 1.5, %v373_v50 }
 0x166   :  { %v2266_v52 = vpop.eup %2265 }
 0x167   :  { %v375_v53 = vmul.f32 %v2264_v46, %v374_v51  ;;  %v381_v54 = vmul.f32 %v2266_v52, %v369_v47  ;;  %vm387_vm4 = vweird.f32 %v2266_v52 }
 0x168   :  { %vm388_vm6 = vmor %vm386_vm5, %vm387_vm4 }
 0x169   :  { %v382_v55 = vmul.f32 %v2266_v52, %v381_v54  ;;  %v379_v56 = vsel %vm378_vm3, %v2264_v46, %v375_v53  ;;  %v337_v46 = vld [vmem:[%s3310_s1] sm:$0x1] }
 0x16a   :  { %v390_v59 = vmul.f32 %v379_v56, %v3024_v11  ;;  %v1829_v47 = vadd.f32 -1.0, %v337_v46 }
 0x16b   :  { %v383_v57 = vmul.f32 0.5, %v382_v55 }
 0x16c   :  { %v395_v2 = vmul.f32 %v2248_v60, %v390_v59  ;;  %v341_v48 = vmul.f32 1e+09, %v1829_v47 }
 0x16d   :  { %v384_v58 = vsub.f32 1.5, %v383_v57 }
 0x16e   :  { %v400_v5 = vadd.f32 %v2249_v3, %v395_v2  ;;  %v3090_v49 = vperm.slane %v341_v48, 0 }
 0x16f   :  { %v385_v61 = vmul.f32 %v2266_v52, %v384_v58 }
 0x171   :  { %v389_v62 = vsel %vm388_vm6, %v2266_v52, %v385_v61  ;;  %v338_v52 = vld [vmem:[%s3310_s1 + $0x1] sm:$0x1] }
 0x172   :  { %v391_v63 = vmul.f32 %v389_v62, %v3030_v15  ;;  %v1830_v54 = vadd.f32 -1.0, %v338_v52 }
 0x174   :  { %v396_v4 = vmul.f32 %v2248_v60, %v391_v63  ;;  %v342_v56 = vmul.f32 1e+09, %v1830_v54 }
 0x176   :  { %v401_v6 = vadd.f32 %v2249_v3, %v396_v4  ;;  %v3097_v57 = vperm.slane %v342_v56, 0 }
 0x178   :  { %v402_v7 = vpack.c.bf16 %v401_v6, %v400_v5 }
 0x17a   :  { %479 = vmatmul.bf16.vlgmr.msra.gmra.mxu0 %v402_v7  ;;  %561 = vmatmul.bf16.vlgmr.msra.gmra.mxu1 %v402_v7 }
 0x17b   :  { %643 = vmatmul.bf16.vlgmr.msra.gmra.mxu2 %v402_v7  ;;  %v2175_v7 = vld [vmem:[#allocation13 + $0x18] sm:$0xff] }
 0x17c   :  { %928 = vmatpush.bf16.msrb.mxu1 %v2175_v7 }
 0x1f7   :  { %v480_v11 = vpop.f32.mrf.mxu0  ;;  %v562_v12 = vpop.f32.mrf.mxu1 }
 0x1f8   :  { %v481_v13 = vadd.f32 %v2250_v9, %v480_v11  ;;  %v563_v14 = vadd.f32 %v2251_v10, %v562_v12  ;;  %v2174_v11 = vld [vmem:[#allocation13 + $0x10] sm:$0xff] }
 0x1f9   :  { %929 = vmatpush.bf16.msrb.mxu1 %v2174_v11 }
 0x1fa   :  { %v649_v16 = vmul.f32 0.17677669, %v481_v13  ;;  %v653_v17 = vpack.c.bf16 %v563_v14, %v563_v14 }
 0x1fc   :  { %v651_v15 = vpack.c.bf16 %v649_v16, %v649_v16  ;;  %v777_v19 = vunpack.c.l.b16 %v653_v17  ;;  %v668_v20 = vsel %vm663_vm7, %v653_v17, 0 }
 0x1fd   :  { %677 = vmatpush.bf16.xpose.msra.mxu3 %v668_v20 }
 0x1fe   :  { %v772_v21 = vunpack.c.l.b16 %v651_v15  ;;  %v778_v22 = vpack.c.b16 %v777_v19, %v777_v19  ;;  %v644_v23 = vpop.f32.mrf.mxu2 }
 0x1ff   :  { %v645_v24 = vadd.f32 %v2252_v18, %v644_v23  ;;  %v482_v25 = vpop.f32.mrf.mxu0  ;;  %v564_v26 = vpop.f32.mrf.mxu1 }
 0x200   :  { %v483_v27 = vadd.f32 %v2250_v9, %v482_v25  ;;  %v565_v28 = vadd.f32 %v2251_v10, %v564_v26  ;;  %779 = vrot.lane.b32.xlu0 %v778_v22, %s2808_s11  ;;  %v773_v29 = vpack.c.b16 %v772_v21, %v772_v21 }
 0x201   :  { %v655_v30 = vpack.c.bf16 %v645_v24, %v645_v24 }
 0x202   :  { %v650_v31 = vmul.f32 0.17677669, %v483_v27  ;;  %v654_v32 = vpack.c.bf16 %v565_v28, %v565_v28  ;;  %774 = vrot.lane.b32.xlu1 %v773_v29, %s2808_s11 }
 0x203   :  { %v732_v35 = vsel %vm730_vm8, %v655_v30, 0  ;;  %v854_v42 = vunpack.c.l.b16 %v655_v30 }
 0x204   :  { %v652_v33 = vpack.c.bf16 %v650_v31, %v650_v31  ;;  %1927 = vmatmul.msk.bf16.vlgmr.msra.gmra.mxu3 %vm663_vm7, %v651_v15  ;;  %v687_v34 = vsel %vm663_vm7, %v654_v32, 0  ;;  %v806_v62 = vunpack.c.l.b16 %v654_v32 }
 0x205   :  { %696 = vmatpush.bf16.xpose.msrb.mxu3 %v687_v34  ;;  %v3079_v43 = vpack.c.b16 %v854_v42, %v854_v42 }
 0x206   :  { %v801_v36 = vunpack.c.l.b16 %v652_v33  ;;  %v646_v37 = vpop.f32.mrf.mxu2  ;;  %v3109_v63 = vpack.c.b16 %v806_v62, %v806_v62 }
 0x207   :  { %v647_v38 = vadd.f32 %v2252_v18, %v646_v37 }
 0x208   :  { %v3071_v39 = vpack.c.b16 %v801_v36, %v801_v36 }
 0x209   :  { %v3073_v40 = vpack.c.bf16 %v647_v38, %v647_v38 }
 0x20a   :  { %803 = vrot.lane.b32.xlu0 %v3071_v39, %s2808_s11 }
 0x20b   :  { %v751_v41 = vsel %vm730_vm8, %v3073_v40, 0 }
 0x20c   :  { %760 = vmatpush.bf16.msrb.mxu0 %v751_v41 }
 0x20d   :  { %741 = vmatpush.bf16.msra.mxu3 %v732_v35 }
 0x212   :  { %856 = vrot.lane.b32.xlu0 %v3079_v43, %s2808_s11 }
 0x214   :  { %1928 = vmatmul.msk.bf16.vlgmr.msrb.gmra.mxu3 %vm663_vm7, %v652_v33 }
 0x21a   :  { %967 = vrot.lane.b32.xlu0 %v778_v22, %s2795_s4 }
 0x222   :  { %965 = vrot.lane.b32.xlu0 %v773_v29, %s2795_s4 }
 0x272   :  { %v780_v44 = vpop.permute.xlu0 %779 }
 0x273   :  { %v785_v45 = vsel %vm663_vm7, %v780_v44, 0 }
 0x274   :  { %794 = vmatpush.bf16.xpose.msrb.mxu3 %v785_v45  ;;  %v775_v25 = vpop.permute.xlu1 %774 }
 0x27c   :  { %v804_v2 = vpop.permute.xlu0 %803 }
 0x284   :  { %v857_v3 = vpop.permute.xlu0 %856 }
 0x285   :  { %v862_v24 = vsel %vm730_vm8, %v857_v3, 0 }
 0x287   :  { %v679_v50 = vpop.f32.mrf.mxu3 }
 0x288   :  { %v680_v51 = vadd.f32 %v679_v50, %v3090_v49 }
 0x28a   :  { %v703_v53 = vsel %vm702_vm9, %v680_v51, -inf }
 0x28b   :  { %704 = vmax.xlane.f32.xlu2 %v703_v53 }
 0x28c   :  { %v968_v9 = vpop.permute.xlu0 %967 }
 0x28d   :  { %v973_v26 = vsel %vm663_vm7, %v968_v9, 0 }
 0x28f   :  { %v681_v55 = vpop.f32.mrf.mxu3 }
 0x290   :  { %v878_v55 = vunpack.c.l.b16 %v3073_v40 }
 0x292   :  { %v3139_v56 = vpack.c.b16 %v878_v55, %v878_v55 }
 0x294   :  { %v3115_v13 = vpop.permute.xlu0 %965 }
 0x297   :  { %v698_v58 = vpop.f32.mrf.mxu3 }
 0x298   :  { %v3100_v59 = vadd.f32 %v698_v58, %v3097_v57 }
 0x29a   :  { %v706_v60 = vsel %vm702_vm9, %v3100_v59, -inf }
 0x29b   :  { %707 = vmax.xlane.f32.xlu0 %v706_v60 }
 0x29f   :  { %v700_v61 = vpop.f32.mrf.mxu3 }
 0x2af   :  { %988 = vrot.lane.b32.xlu0 %v3071_v39, %s2795_s4 }
 0x2b7   :  { %1035 = vrot.lane.b32.xlu0 %v3079_v43, %s2795_s4 }
 0x2bf   :  { %1116 = vrot.lane.b32.xlu0 %v778_v22, %s2809_s24 }
 0x2c7   :  { %1139 = vrot.lane.b32.xlu0 %v3109_v63, %s2809_s24 }
 0x2cf   :  { %1114 = vrot.lane.b32.xlu0 %v773_v29, %s2809_s24 }
 0x2fe   :  { %v705_v4 = vpop.xlane.xlu2 %704 }
 0x2ff   :  { %v709_v5 = vsub.f32 %v680_v51, %v705_v4 }
 0x301   :  { %v711_v6 = vmul.f32 1.442695, %v709_v5 }
 0x303   :  { %2267 = vpow2.f32 %v711_v6 }
 0x309   :  { %v2268_v10 = vpop.eup %2267 }
 0x30a   :  { %v715_v12 = vsel %vm702_vm9, %v2268_v10, 0.0 }
 0x30b   :  { %716 = vadd.xlane.f32.xlu2 %v715_v12 }
 0x30e   :  { %v708_v14 = vpop.xlane.xlu0 %707 }
 0x30f   :  { %v710_v41 = vsub.f32 %v3100_v59, %v708_v14 }
 0x311   :  { %v713_v44 = vmul.f32 1.442695, %v710_v41 }
 0x321   :  { %v3117_v16 = vpop.permute.xlu0 %988 }
 0x323   :  { %808 = vrot.lane.b32.xlu2 %v3109_v63, %s2808_s11 }
 0x329   :  { %v1036_v17 = vpop.permute.xlu0 %1035 }
 0x32a   :  { %v1041_v18 = vsel %vm730_vm8, %v1036_v17, 0  ;;  %v2173_v17 = vld [vmem:[#allocation13 + $0x8] sm:$0xff] }
 0x32b   :  { %1050 = vmatpush.bf16.msra.mxu1 %v1041_v18 }
 0x37e   :  { %v717_v15 = vpop.xlane.xlu2 %716 }
 0x37f   :  { %2269 = vrcp.f32 %v717_v15  ;;  %v2172_v15 = vld [vmem:[#allocation13] sm:$0xff] }
 0x385   :  { %v2270_v19 = vpop.eup %2269 }
 0x386   :  { %v723_v20 = vmul.f32 %v2270_v19, %v2268_v10  ;;  %v809_v21 = vpop.permute.xlu2 %808  ;;  %v1117_v10 = vpop.permute.xlu0 %1116 }
 0x387   :  { %v814_v22 = vsel %vm663_vm7, %v809_v21, 0  ;;  %v1122_v14 = vsel %vm663_vm7, %v1117_v10, 0 }
 0x388   :  { %v725_v23 = vpack.c.bf16 %v723_v20, %v723_v20  ;;  %823 = vmatpush.bf16.xpose.msrb.mxu2 %v814_v22 }
 0x38a   :  { %1929 = vmatmul.msk.bf16.vlgmr.msra.gmra.mxu3 %vm702_vm9, %v725_v23 }
 0x38b   :  { %871 = vmatpush.bf16.msra.mxu3 %v862_v24 }
 0x38f   :  { %1932 = vmatmul.msk.bf16.vlgmr.msrb.gmra.mxu2 %vm663_vm7, %v804_v2 }
 0x390   :  { %957 = vmatpush.bf16.msra.mxu2 %v2173_v17 }
 0x394   :  { %958 = vmatpush.bf16.msra.mxu2 %v2172_v15 }
 0x39a   :  { %1931 = vmatmul.msk.bf16.vlgmr.msrb.gmra.mxu3 %vm663_vm7, %v775_v25 }
 0x39b   :  { %982 = vmatpush.bf16.xpose.msrb.mxu3 %v973_v26 }
 0x40d   :  { %v3128_v27 = vpop.f32.mrf.mxu3 }
 0x412   :  { %v825_v28 = vpop.f32.mrf.mxu2 }
 0x413   :  { %v826_v34 = vadd.f32 %v825_v28, %v3097_v57 }
 0x415   :  { %v745_v29 = vpop.f32.mrf.mxu3  ;;  %v832_v36 = vsel %vm702_vm9, %v826_v34, -inf }
 0x41a   :  { %v827_v30 = vpop.f32.mrf.mxu2 }
 0x41d   :  { %v796_v31 = vpop.f32.mrf.mxu3 }
 0x41e   :  { %v797_v32 = vadd.f32 %v796_v31, %v3090_v49 }
 0x420   :  { %v829_v33 = vsel %vm702_vm9, %v797_v32, -inf }
 0x421   :  { %830 = vmax.xlane.f32.xlu2 %v829_v33 }
 0x425   :  { %v798_v35 = vpop.f32.mrf.mxu3 }
 0x429   :  { %833 = vmax.xlane.f32.xlu2 %v832_v36 }
 0x494   :  { %v831_v37 = vpop.xlane.xlu2 %830 }
 0x495   :  { %v835_v38 = vsub.f32 %v797_v32, %v831_v37 }
 0x497   :  { %v837_v42 = vmul.f32 1.442695, %v835_v38 }
 0x499   :  { %2271 = vpow2.f32 %v837_v42 }
 0x49a   :  { %2273 = vpow2.f32 %v713_v44 }
 0x49c   :  { %v834_v45 = vpop.xlane.xlu2 %833 }
 0x49d   :  { %v836_v46 = vsub.f32 %v826_v34, %v834_v45 }
 0x49f   :  { %v2272_v47 = vpop.eup %2271  ;;  %v839_v48 = vmul.f32 1.442695, %v836_v46 }
 0x4a0   :  { %v841_v50 = vsel %vm702_vm9, %v2272_v47, 0.0  ;;  %v2274_v51 = vpop.eup %2273 }
 0x4a1   :  { %2275 = vpow2.f32 %v839_v48  ;;  %842 = vadd.xlane.f32.xlu1 %v841_v50  ;;  %v718_v53 = vsel %vm702_vm9, %v2274_v51, 0.0 }
 0x4a7   :  { %v2276_v52 = vpop.eup %2275 }
 0x4a8   :  { %v844_v54 = vsel %vm702_vm9, %v2276_v52, 0.0 }
 0x4a9   :  { %719 = vadd.xlane.f32.xlu1 %v718_v53  ;;  %845 = vadd.xlane.f32.xlu2 %v844_v54  ;;  %v2177_v54 = vld [vmem:[#allocation13 + $0x28] sm:$0xff] }
 0x4c1   :  { %990 = vrot.lane.b32.xlu2 %v3109_v63, %s2795_s4 }
 0x4c2   :  { %880 = vrot.lane.b32.xlu1 %v3139_v56, %s2808_s11 }
 0x514   :  { %v843_v58 = vpop.xlane.xlu1 %842 }
 0x515   :  { %2277 = vrcp.f32 %v843_v58  ;;  %v2176_v58 = vld [vmem:[#allocation13 + $0x20] sm:$0xff] }
 0x51b   :  { %v2278_v59 = vpop.eup %2277 }
 0x51c   :  { %v849_v60 = vmul.f32 %v2278_v59, %v2272_v47  ;;  %v720_v61 = vpop.xlane.xlu1 %719  ;;  %v846_v4 = vpop.xlane.xlu2 %845 }
 0x51d   :  { %2279 = vrcp.f32 %v720_v61 }
 0x51e   :  { %v851_v62 = vpack.c.bf16 %v849_v60, %v849_v60  ;;  %2281 = vrcp.f32 %v846_v4 }
 0x520   :  { %1933 = vmatmul.msk.bf16.vlgmr.msra.gmra.mxu3 %vm702_vm9, %v851_v62 }
 0x521   :  { %1104 = vmatpush.bf16.msra.mxu3 %v2177_v54 }
 0x523   :  { %v2280_v2 = vpop.eup %2279 }
 0x524   :  { %v724_v3 = vmul.f32 %v2280_v2, %v2274_v51  ;;  %v2282_v63 = vpop.eup %2281  ;;  %v991_v6 = vpop.permute.xlu2 %990 }
 0x525   :  { %v850_v5 = vmul.f32 %v2282_v63, %v2276_v52  ;;  %v996_v11 = vsel %vm663_vm7, %v991_v6, 0  ;;  %1105 = vmatpush.bf16.msra.mxu3 %v2176_v58 }
 0x526   :  { %v726_v40 = vpack.c.bf16 %v724_v3, %v724_v3 }
 0x527   :  { %v852_v12 = vpack.c.bf16 %v850_v5, %v850_v5 }
 0x528   :  { %1930 = vmatmul.msk.bf16.vlgmr.msrb.gmra.mxu0 %vm702_vm9, %v726_v40 }
 0x530   :  { %1953 = vmatmul.msk.bf16.vlgmr.msrb.gmra.mxu3 %vm663_vm7, %v3115_v13  ;;  %v1140_v13 = vpop.permute.xlu0 %1139 }
 0x531   :  { %v1145_v29 = vsel %vm663_vm7, %v1140_v13, 0 }
 0x534   :  { %v881_v7 = vpop.permute.xlu1 %880 }
 0x535   :  { %v886_v9 = vsel %vm730_vm8, %v881_v7, 0 }
 0x536   :  { %895 = vmatpush.bf16.msra.mxu0 %v886_v9 }
 0x538   :  { %v1115_v18 = vpop.permute.xlu0 %1114 }
 0x539   :  { %1934 = vmatmul.msk.bf16.vlgmr.msra.gmra.mxu0 %vm702_vm9, %v852_v12 }
 0x53a   :  { %1005 = vmatpush.bf16.xpose.msrb.mxu0 %v996_v11 }
 0x542   :  { %1131 = vmatpush.bf16.xpose.msra.mxu0 %v1122_v14 }
 0x549   :  { %1954 = vmatmul.msk.bf16.vlgmr.msrb.gmra.mxu0 %vm663_vm7, %v3117_v16 }
 0x559   :  { %1966 = vmatmul.msk.bf16.vlgmr.msra.gmra.mxu0 %vm663_vm7, %v1115_v18 }
 0x5a3   :  { %v873_v19 = vpop.f32.mrf.mxu3 }
 0x5a5   :  { %v762_v20 = vpop.f32.mrf.mxu0 }
 0x5a6   :  { %v766_v21 = vpack.c.bf16 %v762_v20, %v3128_v27 }
 0x5a8   :  { %1952 = vmatmul.msk.bf16.vlgmr.msra.gmra.mxu2 %vm663_vm7, %v766_v21 }
 0x5ab   :  { %v875_v22 = vpop.f32.mrf.mxu3 }
 0x5ad   :  { %v764_v23 = vpop.f32.mrf.mxu0 }
 0x5b3   :  { %v984_v24 = vpop.f32.mrf.mxu3 }
 0x5b4   :  { %v985_v25 = vadd.f32 %v984_v24, %v3090_v49 }
 0x5b6   :  { %v897_v26 = vpop.f32.mrf.mxu0  ;;  %v1011_v16 = vsel %vm702_vm9, %v985_v25, -inf }
 0x5b7   :  { %v901_v28 = vpack.c.bf16 %v897_v26, %v873_v19  ;;  %1012 = vmax.xlane.f32.xlu1 %v1011_v16 }
 0x5b9   :  { %1943 = vmatmul.msk.bf16.vlgmr.msrb.gmra.mxu1 %vm663_vm7, %v901_v28 }
 0x5ba   :  { %1154 = vmatpush.bf16.xpose.msrb.mxu1 %v1145_v29 }
 0x5bb   :  { %v986_v30 = vpop.f32.mrf.mxu3 }
 0x5be   :  { %v899_v31 = vpop.f32.mrf.mxu0 }
 0x5c6   :  { %v1007_v27 = vpop.f32.mrf.mxu0 }
 0x5c7   :  { %v1008_v32 = vadd.f32 %v1007_v27, %v3097_v57 }
 0x5c9   :  { %v1014_v33 = vsel %vm702_vm9, %v1008_v32, -inf }
 0x5ca   :  { %1015 = vmax.xlane.f32.xlu0 %v1014_v33 }
 0x5ce   :  { %v1009_v34 = vpop.f32.mrf.mxu0 }
 0x5d0   :  { %1137 = vrot.lane.b32.xlu1 %v3071_v39, %s2809_s24 }
 0x5d6   :  { %v1133_v35 = vpop.f32.mrf.mxu0 }
 0x5d7   :  { %v1134_v37 = vadd.f32 %v1133_v35, %v3090_v49 }
 0x5d9   :  { %v1160_v38 = vsel %vm702_vm9, %v1134_v37, -inf }
 0x5de   :  { %v1135_v36 = vpop.f32.mrf.mxu0 }
 0x5fa   :  { %1161 = vmax.xlane.f32.xlu1 %v1160_v38 }
 0x613   :  { %1205 = vrot.lane.b32.xlu1 %v3139_v56, %s2809_s24 }
 0x62a   :  { %v1013_v41 = vpop.xlane.xlu1 %1012 }
 0x62b   :  { %v1017_v42 = vsub.f32 %v985_v25, %v1013_v41  ;;  %v960_v46 = vpop.f32.mrf.mxu2 }
 0x62d   :  { %v1019_v44 = vmul.f32 1.442695, %v1017_v42  ;;  %v2179_v42 = vld [vmem:[#allocation13 + $0x38] sm:$0xff] }
 0x62e   :  { %1253 = vmatpush.bf16.msrb.mxu0 %v2179_v42  ;;  %v1989_v42 = vld [vmem:[#allocation19 + $0x10] sm:$0xf] }
 0x62f   :  { %2283 = vpow2.f32 %v1019_v44 }
 0x633   :  { %v962_v19 = vpop.f32.mrf.mxu2 }
 0x635   :  { %v2284_v45 = vpop.eup %2283 }
 0x636   :  { %v931_v47 = vpop.f32.mrf.mxu1  ;;  %v1023_v48 = vsel %vm702_vm9, %v2284_v45, 0.0 }
 0x637   :  { %v961_v39 = vadd.f32 %v960_v46, %v931_v47  ;;  %1024 = vadd.xlane.f32.xlu2 %v1023_v48 }
 0x63d   :  { %v1016_v50 = vpop.xlane.xlu0 %1015 }
 0x63e   :  { %v1018_v51 = vsub.f32 %v1008_v32, %v1016_v50  ;;  %v933_v14 = vpop.f32.mrf.mxu1 }
 0x640   :  { %v1021_v49 = vmul.f32 1.442695, %v1018_v51 }
 0x642   :  { %2285 = vpow2.f32 %v1021_v49  ;;  %v1138_v55 = vpop.permute.xlu1 %1137  ;;  %v2253_v49 = vld [vmem:[#allocation14] ss:$0 sm:$0xff] }
 0x648   :  { %v2286_v52 = vpop.eup %2285 }
 0x649   :  { %v1026_v53 = vsel %vm702_vm9, %v2286_v52, 0.0 }
 0x64a   :  { %1027 = vadd.xlane.f32.xlu2 %v1026_v53  ;;  %v963_v53 = vadd.f32 %v962_v19, %v933_v14  ;;  %v2192_v14 = vld [vmem:[#allocation19 + $0x64] sm:$0xf]  ;;  %v2191_v19 = vld [vmem:[#allocation19 + $0x54] sm:$0xf0] }
 0x662   :  { %1056 = vrot.lane.b32.xlu2 %v3139_v56, %s2795_s4 }
 0x66d   :  { %v1162_v59 = vpop.xlane.xlu1 %1161 }
 0x66e   :  { %v1166_v60 = vsub.f32 %v1134_v37, %v1162_v59 }
 0x670   :  { %v1168_v61 = vmul.f32 1.442695, %v1166_v60 }
 0x672   :  { %2287 = vpow2.f32 %v1168_v61 }
 0x678   :  { %v2288_v62 = vpop.eup %2287 }
 0x679   :  { %v1172_v2 = vsel %vm702_vm9, %v2288_v62, 0.0 }
 0x67a   :  { %1173 = vadd.xlane.f32.xlu0 %v1172_v2 }
 0x685   :  { %v1206_v3 = vpop.permute.xlu1 %1205 }
 0x686   :  { %v1211_v40 = vsel %vm730_vm8, %v1206_v3, 0 }
 0x687   :  { %1220 = vmatpush.bf16.msrb.mxu3 %v1211_v40 }
 0x6aa   :  { %v1025_v4 = vpop.xlane.xlu2 %1024 }
 0x6ab   :  { %2289 = vrcp.f32 %v1025_v4 }
 0x6b1   :  { %v2290_v63 = vpop.eup %2289 }
 0x6b2   :  { %v1031_v5 = vmul.f32 %v2290_v63, %v2284_v45 }
 0x6b4   :  { %v1033_v56 = vpack.c.bf16 %v1031_v5, %v1031_v5  ;;  %v2037_v5 = vld [vmem:[#allocation19 + $0x70] sm:$0xf] }
 0x6b6   :  { %1955 = vmatmul.msk.bf16.vlgmr.msra.gmra.mxu1 %vm702_vm9, %v1033_v56  ;;  %v2195_v56 = vld [vmem:[#allocation19 + $0x74] sm:$0xf0] }
 0x6bd   :  { %v1028_v6 = vpop.xlane.xlu2 %1027 }
 0x6be   :  { %2291 = vrcp.f32 %v1028_v6  ;;  %v2194_v6 = vld [vmem:[#allocation19 + $0x74] sm:$0xf] }
 0x6c4   :  { %v2292_v7 = vpop.eup %2291 }
 0x6c5   :  { %v1032_v9 = vmul.f32 %v2292_v7, %v2286_v52  ;;  %v1057_v10 = vpop.permute.xlu2 %1056  ;;  %v2038_v7 = vor.u32 %v2195_v56, %v2037_v5  ;;  %v2201_v56 = vld [vmem:[#allocation22 + $0x28] sm:$0xff] }
 0x6c6   :  { %v1062_v11 = vsel %vm730_vm8, %v1057_v10, 0  ;;  %1967 = vmatmul.msk.bf16.vlgmr.msrb.gmra.mxu1 %vm663_vm7, %v1138_v55 }
 0x6c7   :  { %v1034_v12 = vpack.c.bf16 %v1032_v9, %v1032_v9  ;;  %1071 = vmatpush.bf16.msrb.mxu2 %v1062_v11  ;;  %v2039_v9 = vld [vmem:[#allocation19 + $0x78] sm:$0xf0]  ;;  %1426 = vmatpush.bf16.msra.mxu1 %v2038_v7  ;;  %v2029_v11 = vld [vmem:[#allocation19 + $0x60] sm:$0xf] }
 0x6c8   :  { %v2042_v10 = vor.u32 %v2194_v6, %v2039_v9  ;;  %v2209_v6 = vld [vmem:[#allocation22 + $0x68] sm:$0xff] }
 0x6ca   :  { %1956 = vmatmul.msk.bf16.vlgmr.msrb.gmra.mxu2 %vm702_vm9, %v1034_v12  ;;  %v2193_v12 = vld [vmem:[#allocation19 + $0x64] sm:$0xf0] }
 0x6ed   :  { %v1174_v31 = vpop.xlane.xlu0 %1173 }
 0x733   :  { %v1052_v17 = vpop.f32.mrf.mxu1 }
 0x73b   :  { %v1054_v13 = vpop.f32.mrf.mxu1 }
 0x73c   :  { %v2031_v13 = vld [vmem:[#allocation19 + $0x68] sm:$0xf0] }
 0x743   :  { %v1156_v18 = vpop.f32.mrf.mxu1 }
 0x744   :  { %v1157_v15 = vadd.f32 %v1156_v18, %v3097_v57  ;;  %v2034_v18 = vor.u32 %v2192_v14, %v2031_v13 }
 0x746   :  { %v1163_v20 = vsel %vm702_vm9, %v1157_v15, -inf }
 0x747   :  { %1164 = vmax.xlane.f32.xlu2 %v1163_v20  ;;  %v2190_v20 = vld [vmem:[#allocation19 + $0x54] sm:$0xf] }
 0x74b   :  { %v1158_v21 = vpop.f32.mrf.mxu1 }
 0x74d   :  { %v1073_v22 = vpop.f32.mrf.mxu2 }
 0x74e   :  { %v1077_v23 = vpack.c.bf16 %v1073_v22, %v1052_v17  ;;  %v2030_v17 = vor.u32 %v2193_v12, %v2029_v11  ;;  %v2023_v22 = vld [vmem:[#allocation19 + $0x58] sm:$0xf0] }
 0x750   :  { %1965 = vmatmul.msk.bf16.vlgmr.msra.gmra.mxu3 %vm663_vm7, %v1077_v23  ;;  %1427 = vmatpush.bf16.msra.mxu1 %v2030_v17  ;;  %v2026_v23 = vor.u32 %v2190_v20, %v2023_v22 }
 0x755   :  { %v1075_v24 = vpop.f32.mrf.mxu2 }
 0x756   :  { %v2013_v24 = vld [vmem:[#allocation19 + $0x40] sm:$0xf] }
 0x7ba   :  { %v1165_v25 = vpop.xlane.xlu2 %1164 }
 0x7bb   :  { %v1167_v26 = vsub.f32 %v1157_v15, %v1165_v25  ;;  %v2021_v15 = vld [vmem:[#allocation19 + $0x50] sm:$0xf]  ;;  %v2189_v25 = vld [vmem:[#allocation19 + $0x44] sm:$0xf0] }
 0x7bc   :  { %v2022_v21 = vor.u32 %v2191_v19, %v2021_v15 }
 0x7bd   :  { %v1170_v16 = vmul.f32 1.442695, %v1167_v26  ;;  %v2188_v26 = vld [vmem:[#allocation19 + $0x44] sm:$0xf] }
 0x7be   :  { %1428 = vmatpush.bf16.msra.mxu1 %v2022_v21  ;;  %v2254_v21 = vld [vmem:[#allocation16] ss:$0 sm:$0xff] }
 0x7bf   :  { %2293 = vpow2.f32 %v1170_v16  ;;  %v2014_v16 = vor.u32 %v2189_v25, %v2013_v24 }
 0x7c2   :  { %1429 = vmatpush.bf16.msra.mxu1 %v2014_v16 }
 0x7c5   :  { %v2294_v28 = vpop.eup %2293 }
 0x7c6   :  { %v1175_v29 = vsel %vm702_vm9, %v2294_v28, 0.0 }
 0x7c7   :  { %1176 = vadd.xlane.f32.xlu0 %v1175_v29 }
 0x7d3   :  { %v1107_v30 = vpop.f32.mrf.mxu3 }
 0x7d4   :  { %v1112_v57 = vadd.f32 %v1107_v30, %v961_v39  ;;  %v2005_v30 = vld [vmem:[#allocation19 + $0x30] sm:$0xf] }
 0x7db   :  { %1184 = vrot.lane.b32.xlu0 %v3079_v43, %s2809_s24  ;;  %v2178_v43 = vld [vmem:[#allocation13 + $0x30] sm:$0xff]  ;;  %v1109_v44 = vpop.f32.mrf.mxu3 }
 0x7dc   :  { %1254 = vmatpush.bf16.msrb.mxu0 %v2178_v43  ;;  %v1113_v55 = vadd.f32 %v1109_v44, %v963_v53  ;;  %v2183_v43 = vld [vmem:[#allocation19 + $0x14] sm:$0xf0]  ;;  %v2182_v44 = vld [vmem:[#allocation19 + $0x14] sm:$0xf] }
 0x83a   :  { %v1177_v27 = vpop.xlane.xlu0 %1176 }
 0x83b   :  { %2295 = vrcp.f32 %v1177_v27 }
 0x83c   :  { %2297 = vrcp.f32 %v1174_v31  ;;  %v2186_v31 = vld [vmem:[#allocation19 + $0x34] sm:$0xf] }
 0x841   :  { %v2296_v32 = vpop.eup %2295 }
 0x842   :  { %v1181_v33 = vmul.f32 %v2296_v32, %v2294_v28  ;;  %v2298_v35 = vpop.eup %2297  ;;  %v2015_v28 = vld [vmem:[#allocation19 + $0x48] sm:$0xf0]  ;;  %v2007_v32 = vld [vmem:[#allocation19 + $0x38] sm:$0xf0] }
 0x843   :  { %v1180_v36 = vmul.f32 %v2298_v35, %v2288_v62  ;;  %v2018_v29 = vor.u32 %v2188_v26, %v2015_v28  ;;  %v2185_v35 = vld [vmem:[#allocation19 + $0x24] sm:$0xf0]  ;;  %v2255_v26 = vld [vmem:[#allocation17] ss:$0 sm:$0xff] }
 0x844   :  { %v1183_v34 = vpack.c.bf16 %v1181_v33, %v1181_v33  ;;  %v2010_v33 = vor.u32 %v2186_v31, %v2007_v32  ;;  %v2208_v31 = vld [vmem:[#allocation22 + $0x60] sm:$0xff]  ;;  %v2197_v32 = vld [vmem:[#allocation22 + $0x8] sm:$0xff] }
 0x845   :  { %v1182_v41 = vpack.c.bf16 %v1180_v36, %v1180_v36  ;;  %v2184_v36 = vld [vmem:[#allocation19 + $0x24] sm:$0xf] }
 0x846   :  { %1969 = vmatmul.msk.bf16.vlgmr.msrb.gmra.mxu3 %vm702_vm9, %v1183_v34  ;;  %v1997_v34 = vld [vmem:[#allocation19 + $0x20] sm:$0xf] }
 0x84d   :  { %v1185_v37 = vpop.permute.xlu0 %1184 }
 0x84e   :  { %v1190_v38 = vsel %vm730_vm8, %v1185_v37, 0  ;;  %v1998_v37 = vor.u32 %v2185_v35, %v1997_v34  ;;  %v2205_v34 = vld [vmem:[#allocation22 + $0x48] sm:$0xff]  ;;  %v2204_v35 = vld [vmem:[#allocation22 + $0x40] sm:$0xff] }
 0x84f   :  { %1199 = vmatpush.bf16.msra.mxu2 %v1190_v38  ;;  %v1999_v38 = vld [vmem:[#allocation19 + $0x28] sm:$0xf0] }
 0x852   :  { %1968 = vmatmul.msk.bf16.vlgmr.msra.gmra.mxu2 %vm702_vm9, %v1182_v41  ;;  %v2002_v41 = vor.u32 %v2184_v36, %v1999_v38  ;;  %v1340_v36 = vld [vmem:[#allocation20] sm:$0x3] }
 0x853   :  { %1440 = vmatpush.bf16.msrb.mxu2 %v2042_v10  ;;  %v2200_v10 = vld [vmem:[#allocation22 + $0x20] sm:$0xff]  ;;  %v1342_v38 = vperm.slane %v1340_v36, 0 }
 0x857   :  { %1441 = vmatpush.bf16.msrb.mxu2 %v2034_v18 }
 0x85b   :  { %1442 = vmatpush.bf16.msrb.mxu2 %v2026_v23 }
 0x85f   :  { %1443 = vmatpush.bf16.msrb.mxu2 %v2018_v29 }
 0x863   :  { %1444 = vmatpush.bf16.msrb.mxu2 %v2010_v33  ;;  %v2206_v33 = vld [vmem:[#allocation22 + $0x50] sm:$0xff] }
 0x867   :  { %1445 = vmatpush.bf16.msrb.mxu2 %v2002_v41 }
 0x8c9   :  { %v1222_v45 = vpop.f32.mrf.mxu3 }
 0x8d1   :  { %v1224_v46 = vpop.f32.mrf.mxu3 }
 0x8d2   :  { %v1991_v46 = vld [vmem:[#allocation19 + $0x18] sm:$0xf0] }
 0x8d5   :  { %v1201_v47 = vpop.f32.mrf.mxu2 }
 0x8d6   :  { %v1226_v48 = vpack.c.bf16 %v1222_v45, %v1201_v47  ;;  %v1990_v45 = vor.u32 %v2183_v43, %v1989_v42  ;;  %v1981_v47 = vld [vmem:[#allocation19] sm:$0xf] }
 0x8d8   :  { %1978 = vmatmul.msk.bf16.vlgmr.msrb.gmra.mxu0 %vm663_vm7, %v1226_v48  ;;  %v2181_v48 = vld [vmem:[#allocation19 + $0x4] sm:$0xf0] }
 0x8d9   :  { %v1982_v53 = vor.u32 %v2181_v48, %v1981_v47 }
 0x8dd   :  { %v1203_v39 = vpop.f32.mrf.mxu2 }
 0x955   :  { %v1256_v50 = vpop.f32.mrf.mxu0 }
 0x956   :  { %v1261_v51 = vadd.f32 %v1256_v50, %v1112_v57  ;;  %v2187_v57 = vld [vmem:[#allocation19 + $0x34] sm:$0xf0]  ;;  %v1994_v50 = vor.u32 %v2182_v44, %v1991_v46  ;;  %v1343_v44 = vperm.slane %v1340_v36, 1 }
 0x957   :  { %v2006_v27 = vor.u32 %v2187_v57, %v2005_v30  ;;  %v2199_v57 = vld [vmem:[#allocation22 + $0x18] sm:$0xff] }
 0x958   :  { %v1263_v52 = vadd.f32 %v1261_v51, %v3011_v0  ;;  %v2180_v51 = vld [vmem:[#allocation19 + $0x4] sm:$0xf]  ;;  %1446 = vmatpush.bf16.msrb.mxu2 %v1994_v50 }
 0x959   :  { %1430 = vmatpush.bf16.msra.mxu1 %v2006_v27  ;;  %v2207_v27 = vld [vmem:[#allocation22 + $0x58] sm:$0xff] }
 0x95a   :  { %v3191_v54 = vadd.f32 %v2253_v49, %v1263_v52 }
 0x95c   :  { %1273 = vadd.xlane.f32.xlu2 %v3191_v54 }
 0x95d   :  { %v1258_v58 = vpop.f32.mrf.mxu0  ;;  %1431 = vmatpush.bf16.msra.mxu1 %v1998_v37 }
 0x95e   :  { %v1262_v59 = vadd.f32 %v1258_v58, %v1113_v55 }
 0x960   :  { %v1264_v60 = vadd.f32 %v1262_v59, %v3017_v1  ;;  %v2203_v59 = vld [vmem:[#allocation22 + $0x38] sm:$0xff] }
 0x961   :  { %1432 = vmatpush.bf16.msra.mxu1 %v1990_v45  ;;  %1592 = vmatpush.bf16.msra.mxu3 %v2203_v59 }
 0x962   :  { %v3195_v61 = vadd.f32 %v2253_v49, %v1264_v60  ;;  %v1983_v49 = vld [vmem:[#allocation19 + $0x8] sm:$0xf0]  ;;  %v2211_v60 = vld [vmem:[#allocation22 + $0x78] sm:$0xff] }
 0x963   :  { %v1986_v55 = vor.u32 %v2180_v51, %v1983_v49  ;;  %1606 = vmatpush.bf16.msra.mxu0 %v2211_v60 }
 0x964   :  { %1275 = vadd.xlane.f32.xlu0 %v3195_v61 }
 0x965   :  { %1433 = vmatpush.bf16.msra.mxu1 %v1982_v53  ;;  %1447 = vmatpush.bf16.msrb.mxu2 %v1986_v55  ;;  %v2256_v55 = vld [vmem:[#allocation23] ss:$0 sm:$0xff] }
 0x9cf   :  { %v1274_v62 = vpop.xlane.xlu2 %1273 }
 0x9d0   :  { %v1277_v2 = vmul.f32 %v1274_v62, %v3020_v8 }
 0x9d2   :  { %v3200_v3 = vsub.f32 %v3191_v54, %v1277_v2 }
 0x9d4   :  { %v1281_v0 = vmul.f32 %v3200_v3, %v3200_v3 }
 0x9d6   :  { %1283 = vadd.xlane.f32.xlu2 %v1281_v0  ;;  %v2202_v0 = vld [vmem:[#allocation22 + $0x30] sm:$0xff] }
 0x9d7   :  { %v1276_v40 = vpop.xlane.xlu0 %1275  ;;  %1593 = vmatpush.bf16.msra.mxu3 %v2202_v0 }
 0x9d8   :  { %v1278_v4 = vmul.f32 %v1276_v40, %v3020_v8  ;;  %v2210_v40 = vld [vmem:[#allocation22 + $0x70] sm:$0xff] }
 0x9d9   :  { %1607 = vmatpush.bf16.msra.mxu0 %v2210_v40 }
 0x9da   :  { %v3206_v63 = vsub.f32 %v3195_v61, %v1278_v4 }
 0x9db   :  { %1594 = vmatpush.bf16.msra.mxu3 %v2201_v56 }
 0x9dc   :  { %v1282_v1 = vmul.f32 %v3206_v63, %v3206_v63 }
 0x9dd   :  { %1608 = vmatpush.bf16.msra.mxu0 %v2209_v6 }
 0x9de   :  { %1285 = vadd.xlane.f32.xlu1 %v1282_v1 }
 0x9df   :  { %1595 = vmatpush.bf16.msra.mxu3 %v2200_v10 }
 0x9e1   :  { %1609 = vmatpush.bf16.msra.mxu0 %v2208_v31 }
 0x9e3   :  { %1596 = vmatpush.bf16.msra.mxu3 %v2199_v57 }
 0x9e5   :  { %1610 = vmatpush.bf16.msra.mxu0 %v2207_v27 }
 0x9e9   :  { %1611 = vmatpush.bf16.msra.mxu0 %v2206_v33 }
 0x9ed   :  { %1612 = vmatpush.bf16.msra.mxu0 %v2205_v34 }
 0x9f1   :  { %1613 = vmatpush.bf16.msra.mxu0 %v2204_v35 }
 0xa49   :  { %v1284_v39 = vpop.xlane.xlu2 %1283 }
 0xa4a   :  { %v1287_v52 = vmul.f32 %v1284_v39, %v3020_v8 }
 0xa4c   :  { %v1289_v58 = vadd.f32 1e-05, %v1287_v52 }
 0xa4e   :  { %2299 = vrsqrt.f32 %v1289_v58  ;;  %vm1297_vm11 = vweird.f32 %v1289_v58 }
 0xa51   :  { %v1286_v62 = vpop.xlane.xlu1 %1285 }
 0xa52   :  { %v1288_v2 = vmul.f32 %v1286_v62, %v3020_v8 }
 0xa54   :  { %v2300_v4 = vpop.eup %2299  ;;  %v1290_v1 = vadd.f32 1e-05, %v1288_v2 }
 0xa55   :  { %v1292_v5 = vmul.f32 %v2300_v4, %v1289_v58  ;;  %vm1298_vm10 = vweird.f32 %v2300_v4 }
 0xa56   :  { %2301 = vrsqrt.f32 %v1290_v1  ;;  %vm1299_vm12 = vmor %vm1297_vm11, %vm1298_vm10  ;;  %vm1307_vm14 = vweird.f32 %v1290_v1 }
 0xa57   :  { %v1293_v7 = vmul.f32 %v2300_v4, %v1292_v5 }
 0xa59   :  { %v1294_v9 = vmul.f32 0.5, %v1293_v7 }
 0xa5b   :  { %v1295_v11 = vsub.f32 1.5, %v1294_v9 }
 0xa5c   :  { %v2302_v12 = vpop.eup %2301 }
 0xa5d   :  { %v1296_v14 = vmul.f32 %v2300_v4, %v1295_v11  ;;  %v1302_v17 = vmul.f32 %v2302_v12, %v1290_v1  ;;  %vm1308_vm13 = vweird.f32 %v2302_v12 }
 0xa5e   :  { %vm1309_vm15 = vmor %vm1307_vm14, %vm1308_vm13 }
 0xa5f   :  { %v1303_v13 = vmul.f32 %v2302_v12, %v1302_v17  ;;  %v1300_v18 = vsel %vm1299_vm12, %v2300_v4, %v1296_v14  ;;  %v2218_v14 = vld [vmem:[%s3284_s20 + $0x30] sm:$0xff]  ;;  %v2217_v17 = vld [vmem:[%s3284_s20 + $0x28] sm:$0xff] }
 0xa60   :  { %v1311_v20 = vmul.f32 %v1300_v18, %v3200_v3  ;;  %v2198_v3 = vld [vmem:[#allocation22 + $0x10] sm:$0xff]  ;;  %v2215_v18 = vld [vmem:[%s3284_s20 + $0x18] sm:$0xff] }
 0xa61   :  { %v1304_v15 = vmul.f32 0.5, %v1303_v13  ;;  %1597 = vmatpush.bf16.msra.mxu3 %v2198_v3  ;;  %v2216_v13 = vld [vmem:[%s3284_s20 + $0x20] sm:$0xff] }
 0xa62   :  { %v1316_v25 = vmul.f32 %v2254_v21, %v1311_v20 }
 0xa63   :  { %v1305_v19 = vsub.f32 1.5, %v1304_v15  ;;  %v2214_v15 = vld [vmem:[%s3284_s20 + $0x10] sm:$0xff] }
 0xa64   :  { %v1321_v28 = vadd.f32 %v2255_v26, %v1316_v25 }
 0xa65   :  { %v1306_v22 = vmul.f32 %v2302_v12, %v1305_v19  ;;  %1598 = vmatpush.bf16.msra.mxu3 %v2197_v32  ;;  %v2213_v19 = vld [vmem:[%s3284_s20 + $0x8] sm:$0xff] }
 0xa67   :  { %v1310_v23 = vsel %vm1309_vm15, %v2302_v12, %v1306_v22  ;;  %v2212_v22 = vld [vmem:[%s3284_s20] sm:$0xff] }
 0xa68   :  { %v1312_v24 = vmul.f32 %v1310_v23, %v3206_v63  ;;  %v2196_v63 = vld [vmem:[#allocation22] sm:$0xff] }
 0xa69   :  { %1599 = vmatpush.bf16.msra.mxu3 %v2196_v63 }
 0xa6a   :  { %v1317_v16 = vmul.f32 %v2254_v21, %v1312_v24 }
 0xa6c   :  { %v1322_v29 = vadd.f32 %v2255_v26, %v1317_v16 }
 0xa6e   :  { %v1323_v30 = vpack.c.bf16 %v1322_v29, %v1321_v28 }
 0xa70   :  { %1434 = vmatmul.bf16.vlgmr.msra.gmra.mxu1 %v1323_v30  ;;  %1448 = vmatmul.bf16.vlgmr.msrb.gmra.mxu2 %v1323_v30 }
 0xaed   :  { %v1435_v37 = vpop.f32.mrf.mxu1 }
 0xaee   :  { %v1436_v42 = vadd.f32 %v1435_v37, %v1342_v38 }
 0xaf0   :  { %v1454_v46 = vmax.f32 %v1436_v42, 0.0  ;;  %v2258_v42 = vld [vmem:[#allocation26] ss:$0 sm:$0xff] }
 0xaf3   :  { %v1449_v41 = vpop.f32.mrf.mxu2 }
 0xaf4   :  { %v1450_v48 = vadd.f32 %v1449_v41, %v1343_v44 }
 0xaf5   :  { %v1437_v43 = vpop.f32.mrf.mxu1 }
 0xaf6   :  { %v1438_v45 = vadd.f32 %v1437_v43, %v1342_v38  ;;  %v1455_v49 = vmax.f32 %v1450_v48, 0.0  ;;  %v2220_v48 = vld [vmem:[#allocation29] sm:$0xff] }
 0xaf8   :  { %v1456_v47 = vmax.f32 %v1438_v45, 0.0 }
 0xafa   :  { %v1458_v39 = vpack.c.bf16 %v1456_v47, %v1454_v46  ;;  %v2221_v47 = vld [vmem:[#allocation29 + $0x8] sm:$0xff] }
 0xafb   :  { %v1451_v50 = vpop.f32.mrf.mxu2  ;;  %1789 = vmatpush.bf16.msra.mxu2 %v2221_v47 }
 0xafc   :  { %v1452_v51 = vadd.f32 %v1451_v50, %v1343_v44  ;;  %1600 = vmatmul.bf16.vlgmr.msra.gmra.mxu3 %v1458_v39  ;;  %v2259_v50 = vld [vmem:[#allocation28] ss:$0 sm:$0xff] }
 0xafe   :  { %v1457_v52 = vmax.f32 %v1452_v51, 0.0 }
 0xaff   :  { %1790 = vmatpush.bf16.msra.mxu2 %v2220_v48 }
 0xb00   :  { %v1459_v53 = vpack.c.bf16 %v1457_v52, %v1455_v49 }
 0xb02   :  { %1614 = vmatmul.bf16.vlgmr.msra.gmra.mxu0 %v1459_v53 }
 0xb7f   :  { %v1601_v58 = vpop.f32.mrf.mxu3  ;;  %v1615_v59 = vpop.f32.mrf.mxu0 }
 0xb80   :  { %v1602_v60 = vadd.f32 %v2256_v55, %v1601_v58 }
 0xb82   :  { %v1616_v62 = vadd.f32 %v1615_v59, %v1602_v60  ;;  %v2260_v59 = vld [vmem:[%s3287_s23] ss:$0 sm:$0xff] }
 0xb84   :  { %v3215_v2 = vadd.f32 %v1616_v62, %v3191_v54 }
 0xb86   :  { %1624 = vadd.xlane.f32.xlu2 %v3215_v2 }
 0xb87   :  { %v1603_v0 = vpop.f32.mrf.mxu3  ;;  %v1617_v4 = vpop.f32.mrf.mxu0 }
 0xb88   :  { %v1604_v40 = vadd.f32 %v2256_v55, %v1603_v0 }
 0xb8a   :  { %v1618_v1 = vadd.f32 %v1617_v4, %v1604_v40 }
 0xb8c   :  { %v3219_v5 = vadd.f32 %v1618_v1, %v3195_v61  ;;  %v2219_v61 = vld [vmem:[%s3284_s20 + $0x38] sm:$0xff] }
 0xb8d   :  { %1743 = vmatpush.bf16.msrb.mxu1 %v2219_v61 }
 0xb8e   :  { %1626 = vadd.xlane.f32.xlu2 %v3219_v5 }
 0xb91   :  { %1744 = vmatpush.bf16.msrb.mxu1 %v2218_v14 }
 0xb95   :  { %1745 = vmatpush.bf16.msrb.mxu1 %v2217_v17 }
 0xb99   :  { %1746 = vmatpush.bf16.msrb.mxu1 %v2216_v13 }
 0xb9d   :  { %1747 = vmatpush.bf16.msrb.mxu1 %v2215_v18 }
 0xba1   :  { %1748 = vmatpush.bf16.msrb.mxu1 %v2214_v15 }
 0xba5   :  { %1749 = vmatpush.bf16.msrb.mxu1 %v2213_v19 }
 0xba9   :  { %1750 = vmatpush.bf16.msrb.mxu1 %v2212_v22 }
 0xbf9   :  { %v1625_v56 = vpop.xlane.xlu2 %1624 }
 0xbfa   :  { %v1628_v6 = vmul.f32 %v1625_v56, %v3020_v8 }
 0xbfc   :  { %v1630_v7 = vsub.f32 %v3215_v2, %v1628_v6 }
 0xbfe   :  { %v1632_v9 = vmul.f32 %v1630_v7, %v1630_v7 }
 0xc00   :  { %1634 = vadd.xlane.f32.xlu2 %v1632_v9 }
 0xc01   :  { %v1627_v54 = vpop.xlane.xlu2 %1626 }
 0xc02   :  { %v1629_v10 = vmul.f32 %v1627_v54, %v3020_v8 }
 0xc04   :  { %v1631_v11 = vsub.f32 %v3219_v5, %v1629_v10 }
 0xc06   :  { %v1633_v12 = vmul.f32 %v1631_v11, %v1631_v11 }
 0xc08   :  { %1636 = vadd.xlane.f32.xlu2 %v1633_v12 }
 0xc73   :  { %v1635_v20 = vpop.xlane.xlu2 %1634 }
 0xc74   :  { %v1638_v21 = vmul.f32 %v1635_v20, %v3020_v8 }
 0xc76   :  { %v1640_v23 = vadd.f32 1e-05, %v1638_v21 }
 0xc78   :  { %2303 = vrsqrt.f32 %v1640_v23  ;;  %vm1648_vm1 = vweird.f32 %v1640_v23 }
 0xc7b   :  { %v1637_v24 = vpop.xlane.xlu2 %1636 }
 0xc7c   :  { %v1639_v25 = vmul.f32 %v1637_v24, %v3020_v8  ;;  %v2257_v8 = vld [vmem:[#allocation25] ss:$0 sm:$0xff] }
 0xc7e   :  { %v2304_v26 = vpop.eup %2303  ;;  %v1641_v16 = vadd.f32 1e-05, %v1639_v25 }
 0xc7f   :  { %v1643_v28 = vmul.f32 %v2304_v26, %v1640_v23  ;;  %vm1649_vm0 = vweird.f32 %v2304_v26 }
 0xc80   :  { %2305 = vrsqrt.f32 %v1641_v16  ;;  %vm1650_vm2 = vmor %vm1648_vm1, %vm1649_vm0  ;;  %vm1658_vm4 = vweird.f32 %v1641_v16 }
 0xc81   :  { %v1644_v29 = vmul.f32 %v2304_v26, %v1643_v28 }
 0xc83   :  { %v1645_v30 = vmul.f32 0.5, %v1644_v29 }
 0xc85   :  { %v1646_v57 = vsub.f32 1.5, %v1645_v30 }
 0xc86   :  { %v2306_v31 = vpop.eup %2305 }
 0xc87   :  { %v1647_v3 = vmul.f32 %v2304_v26, %v1646_v57  ;;  %v1653_v27 = vmul.f32 %v2306_v31, %v1641_v16  ;;  %vm1659_vm3 = vweird.f32 %v2306_v31 }
 0xc88   :  { %vm1660_vm5 = vmor %vm1658_vm4, %vm1659_vm3 }
 0xc89   :  { %v1654_v32 = vmul.f32 %v2306_v31, %v1653_v27  ;;  %v1651_v33 = vsel %vm1650_vm2, %v2304_v26, %v1647_v3 }
 0xc8a   :  { %v1662_v35 = vmul.f32 %v1651_v33, %v1630_v7 }
 0xc8b   :  { %v1655_v63 = vmul.f32 0.5, %v1654_v32 }
 0xc8c   :  { %v1667_v41 = vmul.f32 %v2257_v8, %v1662_v35 }
 0xc8d   :  { %v1656_v34 = vsub.f32 1.5, %v1655_v63 }
 0xc8e   :  { %v1672_v44 = vadd.f32 %v2258_v42, %v1667_v41 }
 0xc8f   :  { %v1657_v36 = vmul.f32 %v2306_v31, %v1656_v34 }
 0xc91   :  { %v1661_v37 = vsel %vm1660_vm5, %v2306_v31, %v1657_v36 }
 0xc92   :  { %v1663_v38 = vmul.f32 %v1661_v37, %v1631_v11 }
 0xc94   :  { %v1668_v43 = vmul.f32 %v2257_v8, %v1663_v38 }
 0xc96   :  { %v1673_v45 = vadd.f32 %v2258_v42, %v1668_v43 }
 0xc98   :  { %v1674_v46 = vpack.c.bf16 %v1673_v45, %v1672_v44 }
 0xc9a   :  { %1751 = vmatmul.bf16.vlgmr.msrb.gmra.mxu1 %v1674_v46 }
 0xd17   :  { %v1752_v39 = vpop.f32.mrf.mxu1 }
 0xd18   :  { %v1753_v51 = vadd.f32 %v2259_v50, %v1752_v39 }
 0xd1a   :  { %v1757_v53 = vmax.f32 %v1753_v51, 0.0 }
 0xd1f   :  { %v1754_v49 = vpop.f32.mrf.mxu1 }
 0xd20   :  { %v1755_v52 = vadd.f32 %v2259_v50, %v1754_v49 }
 0xd22   :  { %v1758_v55 = vmax.f32 %v1755_v52, 0.0 }
 0xd24   :  { %v1759_v58 = vpack.c.bf16 %v1758_v55, %v1757_v53 }
 0xd26   :  { %2147 = vmatmul.msk.bf16.vlgmr.msra.gmra.mxu2 %vm663_vm7, %v1759_v58 }
 0xda9   :  { %v1792_v60 = vpop.f32.mrf.mxu2 }
 0xdaa   :  { %v1793_v62 = vadd.f32 %v2260_v59, %v1792_v60 }
 0xdac   :  { %v1797_v0 = vadd.f32 %v1793_v62, %v3215_v2 }
 0xdae   :  { %1799 = vst [vmem:[#allocation31] sm:$0xff] %v1797_v0 }
 0xdb1   :  { %v1794_v40 = vpop.f32.mrf.mxu2 }
 0xdb2   :  { %v1795_v4 = vadd.f32 %v2260_v59, %v1794_v40 }
 0xdb4   :  { %v1798_v1 = vadd.f32 %v1795_v4, %v3219_v5 }
 0xdb6   :  { %1800 = vst [vmem:[#allocation31 + $0x8] sm:$0xff] %v1798_v1 }
 0xdb7   :  { %1813 = dma.vmem_to_hbm [thread:$0]  %s1806_s18, 256, %s1808_s22, [#allocation4], %s2801_s5, %s2801_s5, %s2802_s12  }
 0xdb8   :  { %2783 = dma.done.wait [#allocation4], 256  }
 0xdb9   :  { %2784 = vsyncadd [#allocation4], 4294967040 }
 0xdba   :  { %1818 = vsyncpa [#allocation3], 1 }
 0xdbb   :  { %1819 = vsyncpa [#allocation6], 1 }
 0xdbc   :  { %1820 = vsyncpa [#allocation9], 1 }
 0xdbd   :  { %1821 = vsyncpa [#allocation12], 1 }
 0xdbe   :  { %1822 = vsyncpa [#allocation15], 1 }
 0xdbf   :  { %1823 = vsyncpa [#allocation18], 1 }
 0xdc0   :  { %1824 = vsyncpa [#allocation21], 1 }
 0xdc1   :  { %1825 = vsyncpa [#allocation24], 1 }
 0xdc2   :  { %1826 = vsyncpa [#allocation27], 1 }
 0xdc3   :  { %1827 = vsyncpa [#allocation30], 1 }
 0xdc4   :  { %1828 = vsyncpa [#allocation4], 1 }

</bundles_post_ra>
